<compile_context>
chip_gen: v5e
topology: v5e:2x2
jax: 0.10.0
libtpu: 0.0.40
codegen_flags: <defaults>
</compile_context>

<pallas_src>
import jax
import jax.numpy as jnp
from jax.experimental import pallas as pl
from jax.experimental.pallas import tpu as pltpu

FEATURES = 24
FRAMES = 30


def _round_up(n, m):
    return (n + m - 1) // m * m


def _net_kernel(x_ref, wih_ref, whh_ref, bg_ref, w1_ref, b1_ref, w2_ref, b2_ref,
                out_ref, xg_scr, h_scr, c_scr, acc_scr):
    """One batch tile per grid step.

    x_ref   : (T, Bt, F)      time-major input tile
    wih_ref : (F, 4*Hp)       packed/padded input->gate weights
    whh_ref : (Hp, 4*Hp)      packed/padded hidden->gate weights
    bg_ref  : (1, 4*Hp)       combined gate bias (b_ih + b_hh), padded
    w1_ref  : (T, Hp, N1p)    lin1 weight, reshaped per-timestep, padded
    b1_ref  : (1, N1p)        lin1 bias, padded
    w2_ref  : (N1p, N2)       lin2 weight (transposed), padded rows
    b2_ref  : (1, N2)         lin2 bias
    out_ref : (Bt, N2)        softmax probabilities
    """
    T, Bt, F = x_ref.shape
    Hp = h_scr.shape[1]

    # --- input projection for all timesteps in one big MXU matmul -------------
    x_all = x_ref[...].reshape(T * Bt, F)
    xg_scr[...] = (jnp.dot(x_all, wih_ref[...], preferred_element_type=jnp.float32)
                   + bg_ref[...])

    h_scr[...] = jnp.zeros_like(h_scr)
    c_scr[...] = jnp.zeros_like(c_scr)
    acc_scr[...] = jnp.zeros_like(acc_scr)

    # --- sequential LSTM recurrence, lin1 folded into the loop ----------------
    def step(t, carry):
        row = pl.multiple_of(t * Bt, 8)
        gates = xg_scr[pl.ds(row, Bt), :] + jnp.dot(
            h_scr[...], whh_ref[...], preferred_element_type=jnp.float32)
        i_g = jax.nn.sigmoid(gates[:, 0 * Hp:1 * Hp])
        f_g = jax.nn.sigmoid(gates[:, 1 * Hp:2 * Hp])
        g_g = jnp.tanh(gates[:, 2 * Hp:3 * Hp])
        o_g = jax.nn.sigmoid(gates[:, 3 * Hp:4 * Hp])
        c_new = f_g * c_scr[...] + i_g * g_g
        h_new = o_g * jnp.tanh(c_new)
        c_scr[...] = c_new
        h_scr[...] = h_new
        # lin1 contribution of timestep t (avoids materializing the (Bt, T*H) tensor)
        acc_scr[...] += jnp.dot(h_new, w1_ref[t], preferred_element_type=jnp.float32)
        return carry

    jax.lax.fori_loop(0, T, step, 0)

    # --- MLP head: ReLU(lin1) -> lin2 -> softmax -------------------------------
    z1 = jnp.maximum(acc_scr[...] + b1_ref[...], 0.0)
    z2 = jnp.dot(z1, w2_ref[...], preferred_element_type=jnp.float32) + b2_ref[...]
    m = jnp.max(z2, axis=-1, keepdims=True)
    e = jnp.exp(z2 - m)
    out_ref[...] = (e / jnp.sum(e, axis=-1, keepdims=True)).astype(out_ref.dtype)


def net_forward(x, params, *, block_b=128):
    """x: (B, T, F) float32. Returns softmax probabilities (B, 2)."""
    f32 = jnp.float32
    x = x.astype(f32)
    B, T, F = x.shape
    H = params["w_hh"].shape[1]
    N1 = params["w1"].shape[0]
    N2 = params["w2"].shape[0]
    assert params["w1"].shape[1] == T * H, "lin1 expects seq_len == FRAMES"

    LANE = 128
    Hp = _round_up(H, LANE)
    N1p = _round_up(N1, LANE)

    Bp0 = _round_up(B, 8)
    Bt = min(Bp0, block_b)
    Bp = _round_up(B, Bt)
    nb = Bp // Bt

    # ---- constant folding / packing (done once, outside the kernel) ----------
    def gate_pack(w, in_dim, in_pad):
        # torch layout (4H, in) with gate order [i, f, g, o] -> (in_pad, 4*Hp)
        w4 = w.reshape(4, H, in_dim).astype(f32)
        w4p = jnp.zeros((4, Hp, in_pad), f32).at[:, :H, :in_dim].set(w4)
        return w4p.transpose(2, 0, 1).reshape(in_pad, 4 * Hp)

    wih = gate_pack(params["w_ih"], F, F)        # (F, 4*Hp)
    whh = gate_pack(params["w_hh"], H, Hp)       # (Hp, 4*Hp)
    b4 = (params["b_ih"] + params["b_hh"]).reshape(4, H).astype(f32)
    bg = jnp.zeros((4, Hp), f32).at[:, :H].set(b4).reshape(1, 4 * Hp)

    # lin1 weight (N1, T*H): column t*H+j multiplies h_t[:, j]  ->  (T, Hp, N1p)
    w1r = params["w1"].astype(f32).reshape(N1, T, H).transpose(1, 2, 0)
    w1p = jnp.zeros((T, Hp, N1p), f32).at[:, :H, :N1].set(w1r)
    b1p = jnp.zeros((1, N1p), f32).at[0, :N1].set(params["b1"].astype(f32))

    w2p = jnp.zeros((N1p, N2), f32).at[:N1, :].set(params["w2"].astype(f32).T)
    b2p = params["b2"].astype(f32).reshape(1, N2)

    # ---- time-major input, batch padded to a multiple of the batch tile -------
    xt = jnp.transpose(x, (1, 0, 2))
    if Bp != B:
        xt = jnp.pad(xt, ((0, 0), (0, Bp - B), (0, 0)))

    cost = pl.CostEstimate(
        flops=int(2 * B * T * (F * 4 * H + H * 4 * H + H * N1) + 2 * B * N1 * N2),
        transcendentals=int(B * T * 5 * H + B * N2),
        bytes_accessed=int(4 * (B * T * F + B * N2 + 4 * H * (F + H + 2)
                                + N1 * (T * H + 1) + N2 * (N1 + 1))),
    )

    out = pl.pallas_call(
        _net_kernel,
        out_shape=jax.ShapeDtypeStruct((Bp, N2), f32),
        grid=(nb,),
        in_specs=[
            pl.BlockSpec((T, Bt, F), lambda i: (0, i, 0)),        # x tile (time-major)
            pl.BlockSpec((F, 4 * Hp), lambda i: (0, 0)),          # W_ih packed
            pl.BlockSpec((Hp, 4 * Hp), lambda i: (0, 0)),         # W_hh packed
            pl.BlockSpec((1, 4 * Hp), lambda i: (0, 0)),          # gate bias
            pl.BlockSpec((T, Hp, N1p), lambda i: (0, 0, 0)),      # lin1 per-timestep
            pl.BlockSpec((1, N1p), lambda i: (0, 0)),             # lin1 bias
            pl.BlockSpec((N1p, N2), lambda i: (0, 0)),            # lin2 (transposed)
            pl.BlockSpec((1, N2), lambda i: (0, 0)),              # lin2 bias
        ],
        out_specs=pl.BlockSpec((Bt, N2), lambda i: (i, 0)),
        scratch_shapes=[
            pltpu.VMEM((T * Bt, 4 * Hp), f32),    # precomputed input projections
            pltpu.VMEM((Bt, Hp), f32),            # h state
            pltpu.VMEM((Bt, Hp), f32),            # c state
            pltpu.VMEM((Bt, N1p), f32),           # lin1 accumulator
        ],
        compiler_params=pltpu.CompilerParams(dimension_semantics=("parallel",)),
        cost_estimate=cost,
    )(xt, wih, whh, bg, w1p, b1p, w2p, b2p)
    return out[:B]


def net_reference(x, params):
    """Pure-JAX reference (same eval-mode semantics as the PyTorch module)."""
    w_ih, w_hh = params["w_ih"], params["w_hh"]
    b = params["b_ih"] + params["b_hh"]
    B, T, F = x.shape
    H = w_hh.shape[1]

    def step(carry, xt):
        h, c = carry
        gates = xt @ w_ih.T + h @ w_hh.T + b
        i, f, g, o = jnp.split(gates, 4, axis=-1)
        c = jax.nn.sigmoid(f) * c + jax.nn.sigmoid(i) * jnp.tanh(g)
        h = jax.nn.sigmoid(o) * jnp.tanh(c)
        return (h, c), h

    h0 = jnp.zeros((B, H), jnp.float32)
    (_, _), hs = jax.lax.scan(step, (h0, h0), jnp.transpose(x, (1, 0, 2)))
    hs = jnp.transpose(hs, (1, 0, 2)).reshape(B, T * H)
    z1 = jax.nn.relu(hs @ params["w1"].T + params["b1"])
    z2 = z1 @ params["w2"].T + params["b2"]
    return jax.nn.softmax(z2, axis=1)


def init_params(key, features=FEATURES, hidden=FRAMES, seq=FRAMES, n1=26, n2=2):
    ks = jax.random.split(key, 8)
    k_rnn = 1.0 / (hidden ** 0.5)
    k_l1 = 1.0 / ((seq * hidden) ** 0.5)
    k_l2 = 1.0 / (n1 ** 0.5)
    u = lambda kk, shape, bound: jax.random.uniform(kk, shape, jnp.float32, -bound, bound)
    return {
        "w_ih": u(ks[0], (4 * hidden, features), k_rnn),
        "w_hh": u(ks[1], (4 * hidden, hidden), k_rnn),
        "b_ih": u(ks[2], (4 * hidden,), k_rnn),
        "b_hh": u(ks[3], (4 * hidden,), k_rnn),
        "w1": u(ks[4], (n1, seq * hidden), k_l1),
        "b1": u(ks[5], (n1,), k_l1),
        "w2": u(ks[6], (n2, n1), k_l2),
        "b2": u(ks[7], (n2,), k_l2),
    }


if __name__ == "__main__":
    B, T, F = 4, FRAMES, FEATURES           # T and F are fixed by the module definition
    key = jax.random.PRNGKey(0)
    kx, kp = jax.random.split(key)
    x = jax.random.normal(kx, (B, T, F), dtype=jnp.float32)
    params = init_params(kp)

    out = net_forward(x, params)
    jax.block_until_ready(out)

    ref = net_reference(x, params)
    assert out.shape == (B, 2)
    assert bool(jnp.all(jnp.isfinite(out)))
    assert bool(jnp.allclose(jnp.sum(out, axis=1), 1.0, atol=1e-4))
    assert bool(jnp.allclose(out, ref, rtol=1e-3, atol=1e-3))
    print("KERNEL_OK")
</pallas_src>

<mosaic_0001>
module attributes {stable_mosaic.version = 11 : i64} {
  func.func @_net_kernel(%arg0: i32, %arg1: memref<30x8x24xf32, #tpu.memory_space<vmem>>, %arg2: memref<24x512xf32, #tpu.memory_space<vmem>>, %arg3: memref<128x512xf32, #tpu.memory_space<vmem>>, %arg4: memref<1x512xf32, #tpu.memory_space<vmem>>, %arg5: memref<30x128x128xf32, #tpu.memory_space<vmem>>, %arg6: memref<1x128xf32, #tpu.memory_space<vmem>>, %arg7: memref<128x2xf32, #tpu.memory_space<vmem>>, %arg8: memref<1x2xf32, #tpu.memory_space<vmem>>, %arg9: memref<8x2xf32, #tpu.memory_space<vmem>>, %arg10: memref<240x512xf32, #tpu.memory_space<vmem>>, %arg11: memref<8x128xf32, #tpu.memory_space<vmem>>, %arg12: memref<8x128xf32, #tpu.memory_space<vmem>>, %arg13: memref<8x128xf32, #tpu.memory_space<vmem>>) attributes {dimension_semantics = [#tpu.dimension_semantics<parallel>], iteration_bounds = array<i64: 1>, scalar_prefetch = 0 : i64, scratch_operands = 4 : i64, tpu.core_type = #tpu.core_type<tc>, window_params = [{transform_indices = @transform_0, window_bounds = array<i64: 30, 8, 24>}, {pipeline_mode = #tpu.pipeline_mode<synchronous>, transform_indices = @transform_1, window_bounds = array<i64: 24, 512>}, {pipeline_mode = #tpu.pipeline_mode<synchronous>, transform_indices = @transform_2, window_bounds = array<i64: 128, 512>}, {pipeline_mode = #tpu.pipeline_mode<synchronous>, transform_indices = @transform_3, window_bounds = array<i64: 1, 512>}, {pipeline_mode = #tpu.pipeline_mode<synchronous>, transform_indices = @transform_4, window_bounds = array<i64: 30, 128, 128>}, {pipeline_mode = #tpu.pipeline_mode<synchronous>, transform_indices = @transform_5, window_bounds = array<i64: 1, 128>}, {pipeline_mode = #tpu.pipeline_mode<synchronous>, transform_indices = @transform_6, window_bounds = array<i64: 128, 2>}, {pipeline_mode = #tpu.pipeline_mode<synchronous>, transform_indices = @transform_7, window_bounds = array<i64: 1, 2>}, {transform_indices = @transform_8, window_bounds = array<i64: 8, 2>}]} {
    %c0 = arith.constant 0 : index
    %c0_0 = arith.constant 0 : index
    %c0_1 = arith.constant 0 : index
    %0 = vector.load %arg1[%c0, %c0_0, %c0_1] : memref<30x8x24xf32, #tpu.memory_space<vmem>>, vector<30x8x24xf32>
    %1 = vector.shape_cast %0 : vector<30x8x24xf32> to vector<240x24xf32>
    %c0_2 = arith.constant 0 : index
    %c0_3 = arith.constant 0 : index
    %2 = vector.load %arg2[%c0_2, %c0_3] : memref<24x512xf32, #tpu.memory_space<vmem>>, vector<24x512xf32>
    %cst = arith.constant dense<0.000000e+00> : vector<240x512xf32>
    %3 = tpu.matmul %1, %2, %cst {dimension_numbers = #tpu.dot_dimension_numbers<[1], [0], [0], [1], [0, 0, 1, 1], [], []>} : vector<240x24xf32>, vector<24x512xf32>, vector<240x512xf32> -> vector<240x512xf32>
    %c0_4 = arith.constant 0 : index
    %c0_5 = arith.constant 0 : index
    %4 = vector.load %arg4[%c0_4, %c0_5] : memref<1x512xf32, #tpu.memory_space<vmem>>, vector<1x512xf32>
    %5 = vector.broadcast %4 : vector<1x512xf32> to vector<240x512xf32>
    %6 = arith.addf %3, %5 : vector<240x512xf32>
    %c0_6 = arith.constant 0 : index
    %c0_7 = arith.constant 0 : index
    %7 = vector.load %arg10[%c0_6, %c0_7] : memref<240x512xf32, #tpu.memory_space<vmem>>, vector<240x512xf32>
    tpu.vector_store %arg10[%c0_6, %c0_7], %6 {strides = array<i32>} : memref<240x512xf32, #tpu.memory_space<vmem>>, vector<240x512xf32>,
    %cst_8 = arith.constant 0.000000e+00 : f32
    %8 = vector.broadcast %cst_8 : f32 to vector<8x128xf32>
    %c0_9 = arith.constant 0 : index
    %c0_10 = arith.constant 0 : index
    %9 = vector.load %arg11[%c0_9, %c0_10] : memref<8x128xf32, #tpu.memory_space<vmem>>, vector<8x128xf32>
    tpu.vector_store %arg11[%c0_9, %c0_10], %8 {strides = array<i32>} : memref<8x128xf32, #tpu.memory_space<vmem>>, vector<8x128xf32>,
    %cst_11 = arith.constant 0.000000e+00 : f32
    %10 = vector.broadcast %cst_11 : f32 to vector<8x128xf32>
    %c0_12 = arith.constant 0 : index
    %c0_13 = arith.constant 0 : index
    %11 = vector.load %arg12[%c0_12, %c0_13] : memref<8x128xf32, #tpu.memory_space<vmem>>, vector<8x128xf32>
    tpu.vector_store %arg12[%c0_12, %c0_13], %10 {strides = array<i32>} : memref<8x128xf32, #tpu.memory_space<vmem>>, vector<8x128xf32>,
    %cst_14 = arith.constant 0.000000e+00 : f32
    %12 = vector.broadcast %cst_14 : f32 to vector<8x128xf32>
    %c0_15 = arith.constant 0 : index
    %c0_16 = arith.constant 0 : index
    %13 = vector.load %arg13[%c0_15, %c0_16] : memref<8x128xf32, #tpu.memory_space<vmem>>, vector<8x128xf32>
    tpu.vector_store %arg13[%c0_15, %c0_16], %12 {strides = array<i32>} : memref<8x128xf32, #tpu.memory_space<vmem>>, vector<8x128xf32>,
    %c0_i32 = arith.constant 0 : i32
    %c30_i32 = arith.constant 30 : i32
    %14 = arith.addi %c0_i32, %c30_i32 : i32
    %c1_i32 = arith.constant 1 : i32
    scf.for %arg14 = %c0_i32 to %14 step %c1_i32  : i32 {
      %c8_i32 = arith.constant 8 : i32
      %36 = arith.muli %arg14, %c8_i32 : i32
      %37 = tpu.assume_multiple %36, 8 : i32
      %38 = arith.index_cast %37 : i32 to index
      %c0_32 = arith.constant 0 : index
      %39 = vector.load %arg10[%38, %c0_32] : memref<240x512xf32, #tpu.memory_space<vmem>>, vector<8x512xf32>
      %c0_33 = arith.constant 0 : index
      %c0_34 = arith.constant 0 : index
      %40 = vector.load %arg11[%c0_33, %c0_34] : memref<8x128xf32, #tpu.memory_space<vmem>>, vector<8x128xf32>
      %c0_35 = arith.constant 0 : index
      %c0_36 = arith.constant 0 : index
      %41 = vector.load %arg3[%c0_35, %c0_36] : memref<128x512xf32, #tpu.memory_space<vmem>>, vector<128x512xf32>
      %cst_37 = arith.constant dense<0.000000e+00> : vector<8x512xf32>
      %42 = tpu.matmul %40, %41, %cst_37 {dimension_numbers = #tpu.dot_dimension_numbers<[1], [0], [0], [1], [0, 0, 1, 1], [], []>} : vector<8x128xf32>, vector<128x512xf32>, vector<8x512xf32> -> vector<8x512xf32>
      %43 = arith.addf %39, %42 : vector<8x512xf32>
      %44 = vector.extract_strided_slice %43 {offsets = [0, 0], sizes = [8, 128], strides = [1, 1]} : vector<8x512xf32> to vector<8x128xf32>
      %45 = arith.negf %44 : vector<8x128xf32>
      %46 = math.exp %45 : vector<8x128xf32>
      %cst_38 = arith.constant 1.000000e+00 : f32
      %47 = vector.broadcast %cst_38 : f32 to vector<8x128xf32>
      %48 = arith.addf %47, %46 : vector<8x128xf32>
      %49 = arith.divf %47, %48 : vector<8x128xf32>
      %50 = vector.extract_strided_slice %43 {offsets = [0, 128], sizes = [8, 128], strides = [1, 1]} : vector<8x512xf32> to vector<8x128xf32>
      %51 = arith.negf %50 : vector<8x128xf32>
      %52 = math.exp %51 : vector<8x128xf32>
      %cst_39 = arith.constant 1.000000e+00 : f32
      %53 = vector.broadcast %cst_39 : f32 to vector<8x128xf32>
      %54 = arith.addf %53, %52 : vector<8x128xf32>
      %55 = arith.divf %53, %54 : vector<8x128xf32>
      %56 = vector.extract_strided_slice %43 {offsets = [0, 256], sizes = [8, 128], strides = [1, 1]} : vector<8x512xf32> to vector<8x128xf32>
      %57 = math.tanh %56 : vector<8x128xf32>
      %58 = vector.extract_strided_slice %43 {offsets = [0, 384], sizes = [8, 128], strides = [1, 1]} : vector<8x512xf32> to vector<8x128xf32>
      %59 = arith.negf %58 : vector<8x128xf32>
      %60 = math.exp %59 : vector<8x128xf32>
      %cst_40 = arith.constant 1.000000e+00 : f32
      %61 = vector.broadcast %cst_40 : f32 to vector<8x128xf32>
      %62 = arith.addf %61, %60 : vector<8x128xf32>
      %63 = arith.divf %61, %62 : vector<8x128xf32>
      %c0_41 = arith.constant 0 : index
      %c0_42 = arith.constant 0 : index
      %64 = vector.load %arg12[%c0_41, %c0_42] : memref<8x128xf32, #tpu.memory_space<vmem>>, vector<8x128xf32>
      %65 = arith.mulf %55, %64 : vector<8x128xf32>
      %66 = arith.mulf %49, %57 : vector<8x128xf32>
      %67 = arith.addf %65, %66 : vector<8x128xf32>
      %68 = math.tanh %67 : vector<8x128xf32>
      %69 = arith.mulf %63, %68 : vector<8x128xf32>
      %c0_43 = arith.constant 0 : index
      %c0_44 = arith.constant 0 : index
      %70 = vector.load %arg12[%c0_43, %c0_44] : memref<8x128xf32, #tpu.memory_space<vmem>>, vector<8x128xf32>
      tpu.vector_store %arg12[%c0_43, %c0_44], %67 {strides = array<i32>} : memref<8x128xf32, #tpu.memory_space<vmem>>, vector<8x128xf32>,
      %c0_45 = arith.constant 0 : index
      %c0_46 = arith.constant 0 : index
      %71 = vector.load %arg11[%c0_45, %c0_46] : memref<8x128xf32, #tpu.memory_space<vmem>>, vector<8x128xf32>
      tpu.vector_store %arg11[%c0_45, %c0_46], %69 {strides = array<i32>} : memref<8x128xf32, #tpu.memory_space<vmem>>, vector<8x128xf32>,
      %c0_47 = arith.constant 0 : index
      %c0_48 = arith.constant 0 : index
      %72 = vector.load %arg13[%c0_47, %c0_48] : memref<8x128xf32, #tpu.memory_space<vmem>>, vector<8x128xf32>
      %73 = arith.index_cast %arg14 : i32 to index
      %c0_49 = arith.constant 0 : index
      %c0_50 = arith.constant 0 : index
      %74 = vector.load %arg5[%73, %c0_49, %c0_50] : memref<30x128x128xf32, #tpu.memory_space<vmem>>, vector<1x128x128xf32>
      %75 = vector.shape_cast %74 : vector<1x128x128xf32> to vector<128x128xf32>
      %cst_51 = arith.constant dense<0.000000e+00> : vector<8x128xf32>
      %76 = tpu.matmul %69, %75, %cst_51 {dimension_numbers = #tpu.dot_dimension_numbers<[1], [0], [0], [1], [0, 0, 1, 1], [], []>} : vector<8x128xf32>, vector<128x128xf32>, vector<8x128xf32> -> vector<8x128xf32>
      %77 = arith.addf %72, %76 : vector<8x128xf32>
      %c0_52 = arith.constant 0 : index
      %c0_53 = arith.constant 0 : index
      %78 = vector.load %arg13[%c0_52, %c0_53] : memref<8x128xf32, #tpu.memory_space<vmem>>, vector<8x128xf32>
      tpu.vector_store %arg13[%c0_52, %c0_53], %77 {strides = array<i32>} : memref<8x128xf32, #tpu.memory_space<vmem>>, vector<8x128xf32>,
    }
    %c30_i32_17 = arith.constant 30 : i32
    %c0_18 = arith.constant 0 : index
    %c0_19 = arith.constant 0 : index
    %15 = vector.load %arg13[%c0_18, %c0_19] : memref<8x128xf32, #tpu.memory_space<vmem>>, vector<8x128xf32>
    %c0_20 = arith.constant 0 : index
    %c0_21 = arith.constant 0 : index
    %16 = vector.load %arg6[%c0_20, %c0_21] : memref<1x128xf32, #tpu.memory_space<vmem>>, vector<1x128xf32>
    %17 = vector.broadcast %16 : vector<1x128xf32> to vector<8x128xf32>
    %18 = arith.addf %15, %17 : vector<8x128xf32>
    %cst_22 = arith.constant 0.000000e+00 : f32
    %19 = vector.broadcast %cst_22 : f32 to vector<8x128xf32>
    %20 = arith.maximumf %18, %19 : vector<8x128xf32>
    %c0_23 = arith.constant 0 : index
    %c0_24 = arith.constant 0 : index
    %21 = vector.load %arg7[%c0_23, %c0_24] : memref<128x2xf32, #tpu.memory_space<vmem>>, vector<128x2xf32>
    %cst_25 = arith.constant dense<0.000000e+00> : vector<8x2xf32>
    %22 = tpu.matmul %20, %21, %cst_25 {dimension_numbers = #tpu.dot_dimension_numbers<[1], [0], [0], [1], [0, 0, 1, 1], [], []>} : vector<8x128xf32>, vector<128x2xf32>, vector<8x2xf32> -> vector<8x2xf32>
    %c0_26 = arith.constant 0 : index
    %c0_27 = arith.constant 0 : index
    %23 = vector.load %arg8[%c0_26, %c0_27] : memref<1x2xf32, #tpu.memory_space<vmem>>, vector<1x2xf32>
    %24 = vector.broadcast %23 : vector<1x2xf32> to vector<8x2xf32>
    %25 = arith.addf %22, %24 : vector<8x2xf32>
    %cst_28 = arith.constant dense<0xFF800000> : vector<8xf32>
    %26 = vector.multi_reduction <maximumf>, %25, %cst_28 [1] : vector<8x2xf32> to vector<8xf32>
    %27 = vector.shape_cast %26 : vector<8xf32> to vector<8x1xf32>
    %28 = vector.broadcast %27 : vector<8x1xf32> to vector<8x2xf32>
    %29 = arith.subf %25, %28 : vector<8x2xf32>
    %30 = math.exp %29 : vector<8x2xf32>
    %cst_29 = arith.constant dense<0.000000e+00> : vector<8xf32>
    %31 = vector.multi_reduction <add>, %30, %cst_29 [1] : vector<8x2xf32> to vector<8xf32>
    %32 = vector.shape_cast %31 : vector<8xf32> to vector<8x1xf32>
    %33 = vector.broadcast %32 : vector<8x1xf32> to vector<8x2xf32>
    %34 = arith.divf %30, %33 : vector<8x2xf32>
    %c0_30 = arith.constant 0 : index
    %c0_31 = arith.constant 0 : index
    %35 = vector.load %arg9[%c0_30, %c0_31] : memref<8x2xf32, #tpu.memory_space<vmem>>, vector<8x2xf32>
    tpu.vector_store %arg9[%c0_30, %c0_31], %34 {strides = array<i32>} : memref<8x2xf32, #tpu.memory_space<vmem>>, vector<8x2xf32>,
    return
  }
  func.func @transform_0(%arg0: i32) -> (i32, i32, i32) {
    %c0_i32 = arith.constant 0 : i32
    %c0_i32_0 = arith.constant 0 : i32
    %c0_i32_1 = arith.constant 0 : i32
    return %c0_i32, %arg0, %c0_i32_0 : i32, i32, i32
  }
  func.func @transform_1(%arg0: i32) -> (i32, i32) {
    %c0_i32 = arith.constant 0 : i32
    %c0_i32_0 = arith.constant 0 : i32
    %c0_i32_1 = arith.constant 0 : i32
    return %c0_i32, %c0_i32_0 : i32, i32
  }
  func.func @transform_2(%arg0: i32) -> (i32, i32) {
    %c0_i32 = arith.constant 0 : i32
    %c0_i32_0 = arith.constant 0 : i32
    %c0_i32_1 = arith.constant 0 : i32
    return %c0_i32, %c0_i32_0 : i32, i32
  }
  func.func @transform_3(%arg0: i32) -> (i32, i32) {
    %c0_i32 = arith.constant 0 : i32
    %c0_i32_0 = arith.constant 0 : i32
    %c0_i32_1 = arith.constant 0 : i32
    return %c0_i32, %c0_i32_0 : i32, i32
  }
  func.func @transform_4(%arg0: i32) -> (i32, i32, i32) {
    %c0_i32 = arith.constant 0 : i32
    %c0_i32_0 = arith.constant 0 : i32
    %c0_i32_1 = arith.constant 0 : i32
    %c0_i32_2 = arith.constant 0 : i32
    return %c0_i32, %c0_i32_0, %c0_i32_1 : i32, i32, i32
  }
  func.func @transform_5(%arg0: i32) -> (i32, i32) {
    %c0_i32 = arith.constant 0 : i32
    %c0_i32_0 = arith.constant 0 : i32
    %c0_i32_1 = arith.constant 0 : i32
    return %c0_i32, %c0_i32_0 : i32, i32
  }
  func.func @transform_6(%arg0: i32) -> (i32, i32) {
    %c0_i32 = arith.constant 0 : i32
    %c0_i32_0 = arith.constant 0 : i32
    %c0_i32_1 = arith.constant 0 : i32
    return %c0_i32, %c0_i32_0 : i32, i32
  }
  func.func @transform_7(%arg0: i32) -> (i32, i32) {
    %c0_i32 = arith.constant 0 : i32
    %c0_i32_0 = arith.constant 0 : i32
    %c0_i32_1 = arith.constant 0 : i32
    return %c0_i32, %c0_i32_0 : i32, i32
  }
  func.func @transform_8(%arg0: i32) -> (i32, i32) {
    %c0_i32 = arith.constant 0 : i32
    %c0_i32_0 = arith.constant 0 : i32
    return %arg0, %c0_i32 : i32, i32
  }
}

</mosaic_0001>

<bundles_post_ra>
// kernel: tpu_custom_call.1
= control target key start
LH: loop header
LB: loop body
LE: loop exit
PB: predicated region body
PF: predicated region fallthrough
CT: control target
= control target key end

     0   :  { %13 = vsyncpa [#allocation7], 0  ;;  %s2002_s0 = inlined_call_operand.vmem [shape: f32[30,8,24], index: 0, kind: input, shape index: {}]   ;;  %s2003_s1 = inlined_call_operand.hbm [shape: f32[24,512], index: 1, kind: input, shape index: {}]   ;;  %s2004_s2 = inlined_call_operand.hbm [shape: f32[128,512], index: 2, kind: input, shape index: {}]   ;;  %s2005_s3 = inlined_call_operand.hbm [shape: f32[1,512], index: 3, kind: input, shape index: {}]   ;;  %s2006_s4 = inlined_call_operand.hbm [shape: f32[30,128,128], index: 4, kind: input, shape index: {}]   ;;  %s2007_s5 = inlined_call_operand.hbm [shape: f32[1,128], index: 5, kind: input, shape index: {}]   ;;  %s2008_s6 = inlined_call_operand.vmem [shape: f32[128,2], index: 6, kind: input, shape index: {}]   ;;  %s2009_s7 = inlined_call_operand.hbm [shape: f32[1,2], index: 7, kind: input, shape index: {}]   ;;  %s2010_s8 = inlined_call_operand.vmem [shape: f32[8,2], index: 8, kind: output, shape index: {}]  }
   0x1   :  { %14 = vsyncpa [#allocation9], 0 }
   0x2   :  { %15 = vsyncpa [#allocation12], 0 }
   0x3   :  { %16 = vsyncpa [#allocation15], 0  ;;  %s36_s29 = sshll.u32 %s2004_s2, 4  ;;  %s1502_s30 = smov [#allocation8]   ;;  %s37_s29 = int_to_ptr.hbm [resolvable:$true] %s36_s29 }
   0x4   :  { %s38_s9 = sshll.u32 %s1502_s30, 4  ;;  %s60_s12 = sshll.u32 %s2006_s4, 4  ;;  %s39_s9 = int_to_ptr.vmem [resolvable:$true] %s38_s9  ;;  %s61_s12 = int_to_ptr.hbm [resolvable:$true] %s60_s12 }
   0x5   :  { %s1503_s13 = smov 512   ;;  %s1504_s14 = smov 32  }
   0x6   :  { %44 = dma.hbm_to_vmem [thread:$0]  %s37_s29, 8192, %s39_s9, [#allocation9], %s1503_s13, %s1503_s13, %s1504_s14  }
   0x7   :  { %s1505_s15 = smov [#allocation11]   ;;  %s1506_s17 = smov 128  }
   0x8   :  { %s62_s16 = sshll.u32 %s1505_s15, 4  ;;  %s1507_s18 = smov 8   ;;  %s63_s16 = int_to_ptr.vmem [resolvable:$true] %s62_s16 }
   0x9   :  { %68 = dma.hbm_to_vmem [thread:$0]  %s61_s12, 61440, %s63_s16, [#allocation12], %s1506_s17, %s1506_s17, %s1507_s18  }
   0xa   :  { %s23_s20 = sshll.u32 %s2003_s1, 4  ;;  %s1508_s21 = smov [#allocation6]   ;;  %s24_s20 = int_to_ptr.hbm [resolvable:$true] %s23_s20 }
   0xb   :  { %s25_s22 = sshll.u32 %s1508_s21, 4  ;;  %s50_s24 = sshll.u32 %s2005_s3, 4  ;;  %s26_s22 = int_to_ptr.vmem [resolvable:$true] %s25_s22  ;;  %s51_s24 = int_to_ptr.hbm [resolvable:$true] %s50_s24 }
   0xc   :  { %31 = dma.hbm_to_vmem [thread:$0]  %s24_s20, 1536, %s26_s22, [#allocation7], %s1503_s13, %s1503_s13, %s1504_s14  }
   0xd   :  { %s1509_s25 = smov [#allocation10]   ;;  %s74_s29 = sshll.u32 %s2007_s5, 4  ;;  %s75_s29 = int_to_ptr.hbm [resolvable:$true] %s74_s29 }
   0xe   :  { %s52_s26 = sshll.u32 %s1509_s25, 4  ;;  %s87_s9 = sshll.u32 %s2009_s7, 4  ;;  %s53_s26 = int_to_ptr.vmem [resolvable:$true] %s52_s26  ;;  %s88_s9 = int_to_ptr.hbm [resolvable:$true] %s87_s9 }
   0xf   :  { %55 = dma.hbm_to_vmem [thread:$0]  %s51_s24, 64, %s53_s26, [#allocation9]  }
  0x10   :  { %s1510_s10 = smov [#allocation13]   ;;  %s1511_s3 = smov [#allocation14]  }
  0x11   :  { %s76_s11 = sshll.u32 %s1510_s10, 4  ;;  %s89_s12 = sshll.u32 %s1511_s3, 4  ;;  %s77_s11 = int_to_ptr.vmem [resolvable:$true] %s76_s11  ;;  %s90_s12 = int_to_ptr.vmem [resolvable:$true] %s89_s12 }
  0x12   :  { %79 = dma.hbm_to_vmem [thread:$0]  %s75_s29, 16, %s77_s11, [#allocation12]  }
  0x13   :  { %92 = dma.hbm_to_vmem [thread:$0]  %s88_s9, 16, %s90_s12, [#allocation15]  }
  0x14   :  { %1490 = dma.done.wait [#allocation7], 1536  }
  0x15   :  { %1491 = vsyncadd [#allocation7], 4294965760 }
  0x16   :  { %1492 = dma.done.wait [#allocation9], 8256  }
  0x17   :  { %1493 = vsyncadd [#allocation9], 4294959040 }
  0x18   :  { %1494 = dma.done.wait [#allocation12], 61456  }
  0x19   :  { %1495 = vsyncadd [#allocation12], 4294905840 }
  0x1a   :  { %1496 = dma.done.wait [#allocation15], 16  }
  0x1b   :  { %1497 = vsyncadd [#allocation15], 4294967280  ;;  %v1512_v0 = vmov 0.0   ;;  %v157_v1 = vld [vmem:[#allocation6 + $0x50] sm:$0xff]  ;;  %v158_v2 = vld [vmem:[#allocation6 + $0x58] sm:$0xff]  ;;  %vm169_vm0 = vcmask 195584  }
  0x1c   :  { %808 = vst [vmem:[#allocation3] sm:$0xff] %v1512_v0  ;;  %v153_v3 = vld [vmem:[#allocation6 + $0x30] sm:$0xff]  ;;  %487 = vmatpush.msra.mxu2 %v157_v1  ;;  %594 = vmatpush.msra.mxu3 %v158_v2  ;;  %v154_v4 = vld [vmem:[#allocation6 + $0x38] sm:$0xff]  ;;  %v155_v7 = vld [vmem:[#allocation6 + $0x40] sm:$0xff] }
  0x1d   :  { %809 = vst [vmem:[#allocation4] sm:$0xff] %v1512_v0  ;;  %v149_v5 = vld [vmem:[#allocation6 + $0x10] sm:$0xff]  ;;  %v150_v6 = vld [vmem:[#allocation6 + $0x18] sm:$0xff]  ;;  %v156_v8 = vld [vmem:[#allocation6 + $0x48] sm:$0xff]  ;;  %273 = vmatpush.msra.mxu0 %v155_v7 }
  0x1e   :  { %810 = vst [vmem:[#allocation5] sm:$0xff] %v1512_v0  ;;  %488 = vmatpush.msra.mxu2 %v153_v3  ;;  %595 = vmatpush.msra.mxu3 %v154_v4  ;;  %v117_v9 = vld [vmem:[%s2002_s0] sm:$0xff]  ;;  %v151_v10 = vld [vmem:[#allocation6 + $0x20] sm:$0xff]  ;;  %v118_v14 = vld [vmem:[%s2002_s0 + $0x8] sm:$0xff] }
  0x1f   :  { %380 = vmatpush.msra.mxu1 %v156_v8  ;;  %v152_v11 = vld [vmem:[#allocation6 + $0x28] sm:$0xff]  ;;  %v147_v12 = vld [vmem:[#allocation6] sm:$0xff]  ;;  %274 = vmatpush.msra.mxu0 %v151_v10  ;;  %v119_v15 = vld [vmem:[%s2002_s0 + $0x10] sm:$0xff] }
  0x20   :  { %489 = vmatpush.msra.mxu2 %v149_v5  ;;  %596 = vmatpush.msra.mxu3 %v150_v6  ;;  %v148_v13 = vld [vmem:[#allocation6 + $0x8] sm:$0xff]  ;;  %v120_v16 = vld [vmem:[%s2002_s0 + $0x18] sm:$0xff]  ;;  %v122_v18 = vld [vmem:[%s2002_s0 + $0x28] sm:$0xff] }
  0x21   :  { %1233 = vmatmul.msk.f32.vlgmr.msra.gmra.mxu2 %vm169_vm0, %v117_v9  ;;  %1263 = vmatmul.msk.f32.vlgmr.msra.gmra.mxu3 %vm169_vm0, %v117_v9  ;;  %v121_v17 = vld [vmem:[%s2002_s0 + $0x20] sm:$0xff]  ;;  %v123_v19 = vld [vmem:[%s2002_s0 + $0x30] sm:$0xff]  ;;  %v124_v20 = vld [vmem:[%s2002_s0 + $0x38] sm:$0xff] }
  0x22   :  { %381 = vmatpush.msra.mxu1 %v152_v11  ;;  %275 = vmatpush.msra.mxu0 %v147_v12  ;;  %v125_v21 = vld [vmem:[%s2002_s0 + $0x40] sm:$0xff]  ;;  %v126_v22 = vld [vmem:[%s2002_s0 + $0x48] sm:$0xff]  ;;  %v127_v23 = vld [vmem:[%s2002_s0 + $0x50] sm:$0xff] }
  0x23   :  { %1173 = vmatmul.msk.f32.vlgmr.msra.gmra.mxu0 %vm169_vm0, %v117_v9  ;;  %v128_v24 = vld [vmem:[%s2002_s0 + $0x58] sm:$0xff]  ;;  %v129_v25 = vld [vmem:[%s2002_s0 + $0x60] sm:$0xff]  ;;  %v130_v26 = vld [vmem:[%s2002_s0 + $0x68] sm:$0xff] }
  0x24   :  { %382 = vmatpush.msra.mxu1 %v148_v13  ;;  %v131_v27 = vld [vmem:[%s2002_s0 + $0x70] sm:$0xff]  ;;  %v132_v28 = vld [vmem:[%s2002_s0 + $0x78] sm:$0xff]  ;;  %v133_v30 = vld [vmem:[%s2002_s0 + $0x80] sm:$0xff] }
  0x25   :  { %1203 = vmatmul.msk.f32.vlgmr.msra.gmra.mxu1 %vm169_vm0, %v117_v9  ;;  %v159_v29 = vld [vmem:[#allocation10] sm:$0xf]  ;;  %v134_v43 = vld [vmem:[%s2002_s0 + $0x88] sm:$0xff]  ;;  %v135_v52 = vld [vmem:[%s2002_s0 + $0x90] sm:$0xff] }
  0x26   :  { %v1691_v31 = vperm.slane %v159_v29, 0  ;;  %v1693_v32 = vperm.slane %v159_v29, 1  ;;  %v1697_v33 = vperm.slane %v159_v29, 2  ;;  %v1699_v34 = vperm.slane %v159_v29, 3  ;;  %v136_v61 = vld [vmem:[%s2002_s0 + $0x98] sm:$0xff]  ;;  %v137_v6 = vld [vmem:[%s2002_s0 + $0xa0] sm:$0xff] }
  0x29   :  { %1234 = vmatmul.msk.f32.gmra.mxu2 %vm169_vm0, %v118_v14  ;;  %1264 = vmatmul.msk.f32.gmra.mxu3 %vm169_vm0, %v118_v14 }
  0x2b   :  { %1174 = vmatmul.msk.f32.gmra.mxu0 %vm169_vm0, %v118_v14 }
  0x2d   :  { %1204 = vmatmul.msk.f32.gmra.mxu1 %vm169_vm0, %v118_v14 }
  0x31   :  { %1235 = vmatmul.msk.f32.gmra.mxu2 %vm169_vm0, %v119_v15  ;;  %1265 = vmatmul.msk.f32.gmra.mxu3 %vm169_vm0, %v119_v15 }
  0x33   :  { %1175 = vmatmul.msk.f32.gmra.mxu0 %vm169_vm0, %v119_v15 }
  0x35   :  { %1205 = vmatmul.msk.f32.gmra.mxu1 %vm169_vm0, %v119_v15  ;;  %v138_v15 = vld [vmem:[%s2002_s0 + $0xa8] sm:$0xff] }
  0x39   :  { %1236 = vmatmul.msk.f32.gmra.mxu2 %vm169_vm0, %v120_v16  ;;  %1266 = vmatmul.msk.f32.gmra.mxu3 %vm169_vm0, %v120_v16 }
  0x3b   :  { %1176 = vmatmul.msk.f32.gmra.mxu0 %vm169_vm0, %v120_v16 }
  0x3d   :  { %1206 = vmatmul.msk.f32.gmra.mxu1 %vm169_vm0, %v120_v16 }
  0x41   :  { %1237 = vmatmul.msk.f32.gmra.mxu2 %vm169_vm0, %v121_v17  ;;  %1267 = vmatmul.msk.f32.gmra.mxu3 %vm169_vm0, %v121_v17 }
  0x43   :  { %1177 = vmatmul.msk.f32.gmra.mxu0 %vm169_vm0, %v121_v17 }
  0x45   :  { %1207 = vmatmul.msk.f32.gmra.mxu1 %vm169_vm0, %v121_v17 }
  0x49   :  { %1238 = vmatmul.msk.f32.gmra.mxu2 %vm169_vm0, %v122_v18  ;;  %1268 = vmatmul.msk.f32.gmra.mxu3 %vm169_vm0, %v122_v18 }
  0x4b   :  { %1178 = vmatmul.msk.f32.gmra.mxu0 %vm169_vm0, %v122_v18 }
  0x4d   :  { %1208 = vmatmul.msk.f32.gmra.mxu1 %vm169_vm0, %v122_v18 }
  0x51   :  { %1239 = vmatmul.msk.f32.gmra.mxu2 %vm169_vm0, %v123_v19  ;;  %1269 = vmatmul.msk.f32.gmra.mxu3 %vm169_vm0, %v123_v19 }
  0x53   :  { %1179 = vmatmul.msk.f32.gmra.mxu0 %vm169_vm0, %v123_v19 }
  0x55   :  { %1209 = vmatmul.msk.f32.gmra.mxu1 %vm169_vm0, %v123_v19 }
  0x59   :  { %1240 = vmatmul.msk.f32.gmra.mxu2 %vm169_vm0, %v124_v20  ;;  %1270 = vmatmul.msk.f32.gmra.mxu3 %vm169_vm0, %v124_v20 }
  0x5b   :  { %1180 = vmatmul.msk.f32.gmra.mxu0 %vm169_vm0, %v124_v20 }
  0x5d   :  { %1210 = vmatmul.msk.f32.gmra.mxu1 %vm169_vm0, %v124_v20 }
  0x61   :  { %1241 = vmatmul.msk.f32.gmra.mxu2 %vm169_vm0, %v125_v21  ;;  %1271 = vmatmul.msk.f32.gmra.mxu3 %vm169_vm0, %v125_v21 }
  0x63   :  { %1181 = vmatmul.msk.f32.gmra.mxu0 %vm169_vm0, %v125_v21 }
  0x65   :  { %1211 = vmatmul.msk.f32.gmra.mxu1 %vm169_vm0, %v125_v21 }
  0x69   :  { %1242 = vmatmul.msk.f32.gmra.mxu2 %vm169_vm0, %v126_v22  ;;  %1272 = vmatmul.msk.f32.gmra.mxu3 %vm169_vm0, %v126_v22 }
  0x6b   :  { %1182 = vmatmul.msk.f32.gmra.mxu0 %vm169_vm0, %v126_v22 }
  0x6d   :  { %1212 = vmatmul.msk.f32.gmra.mxu1 %vm169_vm0, %v126_v22 }
  0x71   :  { %1243 = vmatmul.msk.f32.gmra.mxu2 %vm169_vm0, %v127_v23  ;;  %1273 = vmatmul.msk.f32.gmra.mxu3 %vm169_vm0, %v127_v23 }
  0x73   :  { %1183 = vmatmul.msk.f32.gmra.mxu0 %vm169_vm0, %v127_v23 }
  0x75   :  { %1213 = vmatmul.msk.f32.gmra.mxu1 %vm169_vm0, %v127_v23 }
  0x79   :  { %1244 = vmatmul.msk.f32.gmra.mxu2 %vm169_vm0, %v128_v24  ;;  %1274 = vmatmul.msk.f32.gmra.mxu3 %vm169_vm0, %v128_v24 }
  0x7b   :  { %1184 = vmatmul.msk.f32.gmra.mxu0 %vm169_vm0, %v128_v24 }
  0x7d   :  { %1214 = vmatmul.msk.f32.gmra.mxu1 %vm169_vm0, %v128_v24  ;;  %v139_v24 = vld [vmem:[%s2002_s0 + $0xb0] sm:$0xff] }
  0x81   :  { %1245 = vmatmul.msk.f32.gmra.mxu2 %vm169_vm0, %v129_v25  ;;  %1275 = vmatmul.msk.f32.gmra.mxu3 %vm169_vm0, %v129_v25 }
  0x83   :  { %1185 = vmatmul.msk.f32.gmra.mxu0 %vm169_vm0, %v129_v25 }
  0x85   :  { %1215 = vmatmul.msk.f32.gmra.mxu1 %vm169_vm0, %v129_v25 }
  0x89   :  { %1246 = vmatmul.msk.f32.gmra.mxu2 %vm169_vm0, %v130_v26  ;;  %1276 = vmatmul.msk.f32.gmra.mxu3 %vm169_vm0, %v130_v26 }
  0x8b   :  { %1186 = vmatmul.msk.f32.gmra.mxu0 %vm169_vm0, %v130_v26 }
  0x8d   :  { %1216 = vmatmul.msk.f32.gmra.mxu1 %vm169_vm0, %v130_v26 }
  0x91   :  { %1247 = vmatmul.msk.f32.gmra.mxu2 %vm169_vm0, %v131_v27  ;;  %1277 = vmatmul.msk.f32.gmra.mxu3 %vm169_vm0, %v131_v27 }
  0x93   :  { %1187 = vmatmul.msk.f32.gmra.mxu0 %vm169_vm0, %v131_v27 }
  0x95   :  { %1217 = vmatmul.msk.f32.gmra.mxu1 %vm169_vm0, %v131_v27 }
  0x99   :  { %1248 = vmatmul.msk.f32.gmra.mxu2 %vm169_vm0, %v132_v28  ;;  %1278 = vmatmul.msk.f32.gmra.mxu3 %vm169_vm0, %v132_v28 }
  0x9b   :  { %1188 = vmatmul.msk.f32.gmra.mxu0 %vm169_vm0, %v132_v28 }
  0x9d   :  { %1218 = vmatmul.msk.f32.gmra.mxu1 %vm169_vm0, %v132_v28 }
  0xa0   :  { %v277_v35 = vpop.f32.mrf.mxu0 }
  0xa1   :  { %1249 = vmatmul.msk.f32.gmra.mxu2 %vm169_vm0, %v133_v30  ;;  %1279 = vmatmul.msk.f32.gmra.mxu3 %vm169_vm0, %v133_v30  ;;  %v278_v37 = vadd.f32 %v277_v35, %v1691_v31 }
  0xa2   :  { %v384_v36 = vpop.f32.mrf.mxu1 }
  0xa3   :  { %v385_v38 = vadd.f32 %v384_v36, %v1693_v32  ;;  %688 = vst [vmem:[#allocation2] sm:$0xff] %v278_v37  ;;  %1189 = vmatmul.msk.f32.gmra.mxu0 %vm169_vm0, %v133_v30  ;;  %v140_v37 = vld [vmem:[%s2002_s0 + $0xb8] sm:$0xff] }
  0xa4   :  { %v491_v39 = vpop.f32.mrf.mxu2  ;;  %v598_v40 = vpop.f32.mrf.mxu3 }
  0xa5   :  { %v492_v41 = vadd.f32 %v491_v39, %v1697_v33  ;;  %v599_v42 = vadd.f32 %v598_v40, %v1699_v34  ;;  %1219 = vmatmul.msk.f32.gmra.mxu1 %vm169_vm0, %v133_v30  ;;  %689 = vst [vmem:[#allocation2 + $0x8] sm:$0xff] %v385_v38 }
  0xa7   :  { %690 = vst [vmem:[#allocation2 + $0x10] sm:$0xff] %v492_v41 }
  0xa8   :  { %691 = vst [vmem:[#allocation2 + $0x18] sm:$0xff] %v599_v42  ;;  %v280_v44 = vpop.f32.mrf.mxu0 }
  0xa9   :  { %1250 = vmatmul.msk.f32.gmra.mxu2 %vm169_vm0, %v134_v43  ;;  %1280 = vmatmul.msk.f32.gmra.mxu3 %vm169_vm0, %v134_v43  ;;  %v281_v46 = vadd.f32 %v280_v44, %v1691_v31 }
  0xaa   :  { %v387_v45 = vpop.f32.mrf.mxu1 }
  0xab   :  { %v388_v47 = vadd.f32 %v387_v45, %v1693_v32  ;;  %692 = vst [vmem:[#allocation2 + $0x20] sm:$0xff] %v281_v46  ;;  %1190 = vmatmul.msk.f32.gmra.mxu0 %vm169_vm0, %v134_v43  ;;  %v141_v46 = vld [vmem:[%s2002_s0 + $0xc0] sm:$0xff] }
  0xac   :  { %v494_v48 = vpop.f32.mrf.mxu2  ;;  %v601_v49 = vpop.f32.mrf.mxu3 }
  0xad   :  { %v495_v50 = vadd.f32 %v494_v48, %v1697_v33  ;;  %v602_v51 = vadd.f32 %v601_v49, %v1699_v34  ;;  %1220 = vmatmul.msk.f32.gmra.mxu1 %vm169_vm0, %v134_v43  ;;  %693 = vst [vmem:[#allocation2 + $0x28] sm:$0xff] %v388_v47 }
  0xaf   :  { %694 = vst [vmem:[#allocation2 + $0x30] sm:$0xff] %v495_v50 }
  0xb0   :  { %695 = vst [vmem:[#allocation2 + $0x38] sm:$0xff] %v602_v51  ;;  %v283_v53 = vpop.f32.mrf.mxu0 }
  0xb1   :  { %1251 = vmatmul.msk.f32.gmra.mxu2 %vm169_vm0, %v135_v52  ;;  %1281 = vmatmul.msk.f32.gmra.mxu3 %vm169_vm0, %v135_v52  ;;  %v284_v55 = vadd.f32 %v283_v53, %v1691_v31 }
  0xb2   :  { %v390_v54 = vpop.f32.mrf.mxu1 }
  0xb3   :  { %v391_v56 = vadd.f32 %v390_v54, %v1693_v32  ;;  %696 = vst [vmem:[#allocation2 + $0x40] sm:$0xff] %v284_v55  ;;  %1191 = vmatmul.msk.f32.gmra.mxu0 %vm169_vm0, %v135_v52  ;;  %v142_v55 = vld [vmem:[%s2002_s0 + $0xc8] sm:$0xff] }
  0xb4   :  { %v497_v57 = vpop.f32.mrf.mxu2  ;;  %v604_v58 = vpop.f32.mrf.mxu3 }
  0xb5   :  { %v498_v59 = vadd.f32 %v497_v57, %v1697_v33  ;;  %v605_v60 = vadd.f32 %v604_v58, %v1699_v34  ;;  %1221 = vmatmul.msk.f32.gmra.mxu1 %vm169_vm0, %v135_v52  ;;  %697 = vst [vmem:[#allocation2 + $0x48] sm:$0xff] %v391_v56 }
  0xb7   :  { %698 = vst [vmem:[#allocation2 + $0x50] sm:$0xff] %v498_v59 }
  0xb8   :  { %699 = vst [vmem:[#allocation2 + $0x58] sm:$0xff] %v605_v60  ;;  %v286_v62 = vpop.f32.mrf.mxu0 }
  0xb9   :  { %1252 = vmatmul.msk.f32.gmra.mxu2 %vm169_vm0, %v136_v61  ;;  %1282 = vmatmul.msk.f32.gmra.mxu3 %vm169_vm0, %v136_v61  ;;  %v287_v0 = vadd.f32 %v286_v62, %v1691_v31 }
  0xba   :  { %v393_v63 = vpop.f32.mrf.mxu1 }
  0xbb   :  { %v394_v1 = vadd.f32 %v393_v63, %v1693_v32  ;;  %700 = vst [vmem:[#allocation2 + $0x60] sm:$0xff] %v287_v0  ;;  %1192 = vmatmul.msk.f32.gmra.mxu0 %vm169_vm0, %v136_v61  ;;  %v143_v0 = vld [vmem:[%s2002_s0 + $0xd0] sm:$0xff] }
  0xbc   :  { %v500_v2 = vpop.f32.mrf.mxu2  ;;  %v607_v3 = vpop.f32.mrf.mxu3 }
  0xbd   :  { %v501_v4 = vadd.f32 %v500_v2, %v1697_v33  ;;  %v608_v5 = vadd.f32 %v607_v3, %v1699_v34  ;;  %1222 = vmatmul.msk.f32.gmra.mxu1 %vm169_vm0, %v136_v61  ;;  %701 = vst [vmem:[#allocation2 + $0x68] sm:$0xff] %v394_v1 }
  0xbf   :  { %702 = vst [vmem:[#allocation2 + $0x70] sm:$0xff] %v501_v4 }
  0xc0   :  { %703 = vst [vmem:[#allocation2 + $0x78] sm:$0xff] %v608_v5  ;;  %v289_v7 = vpop.f32.mrf.mxu0 }
  0xc1   :  { %1253 = vmatmul.msk.f32.gmra.mxu2 %vm169_vm0, %v137_v6  ;;  %1283 = vmatmul.msk.f32.gmra.mxu3 %vm169_vm0, %v137_v6  ;;  %v290_v9 = vadd.f32 %v289_v7, %v1691_v31 }
  0xc2   :  { %v396_v8 = vpop.f32.mrf.mxu1 }
  0xc3   :  { %v397_v10 = vadd.f32 %v396_v8, %v1693_v32  ;;  %704 = vst [vmem:[#allocation2 + $0x80] sm:$0xff] %v290_v9  ;;  %1193 = vmatmul.msk.f32.gmra.mxu0 %vm169_vm0, %v137_v6  ;;  %v144_v9 = vld [vmem:[%s2002_s0 + $0xd8] sm:$0xff] }
  0xc4   :  { %v503_v11 = vpop.f32.mrf.mxu2  ;;  %v610_v12 = vpop.f32.mrf.mxu3 }
  0xc5   :  { %v504_v13 = vadd.f32 %v503_v11, %v1697_v33  ;;  %v611_v14 = vadd.f32 %v610_v12, %v1699_v34  ;;  %1223 = vmatmul.msk.f32.gmra.mxu1 %vm169_vm0, %v137_v6  ;;  %705 = vst [vmem:[#allocation2 + $0x88] sm:$0xff] %v397_v10 }
  0xc7   :  { %706 = vst [vmem:[#allocation2 + $0x90] sm:$0xff] %v504_v13 }
  0xc8   :  { %707 = vst [vmem:[#allocation2 + $0x98] sm:$0xff] %v611_v14  ;;  %v292_v16 = vpop.f32.mrf.mxu0 }
  0xc9   :  { %1254 = vmatmul.msk.f32.gmra.mxu2 %vm169_vm0, %v138_v15  ;;  %1284 = vmatmul.msk.f32.gmra.mxu3 %vm169_vm0, %v138_v15  ;;  %v293_v18 = vadd.f32 %v292_v16, %v1691_v31 }
  0xca   :  { %v399_v17 = vpop.f32.mrf.mxu1 }
  0xcb   :  { %v400_v19 = vadd.f32 %v399_v17, %v1693_v32  ;;  %708 = vst [vmem:[#allocation2 + $0xa0] sm:$0xff] %v293_v18  ;;  %1194 = vmatmul.msk.f32.gmra.mxu0 %vm169_vm0, %v138_v15  ;;  %v145_v18 = vld [vmem:[%s2002_s0 + $0xe0] sm:$0xff] }
  0xcc   :  { %v506_v20 = vpop.f32.mrf.mxu2  ;;  %v613_v21 = vpop.f32.mrf.mxu3 }
  0xcd   :  { %v507_v22 = vadd.f32 %v506_v20, %v1697_v33  ;;  %v614_v23 = vadd.f32 %v613_v21, %v1699_v34  ;;  %1224 = vmatmul.msk.f32.gmra.mxu1 %vm169_vm0, %v138_v15  ;;  %709 = vst [vmem:[#allocation2 + $0xa8] sm:$0xff] %v400_v19 }
  0xcf   :  { %710 = vst [vmem:[#allocation2 + $0xb0] sm:$0xff] %v507_v22 }
  0xd0   :  { %711 = vst [vmem:[#allocation2 + $0xb8] sm:$0xff] %v614_v23  ;;  %v295_v25 = vpop.f32.mrf.mxu0 }
  0xd1   :  { %1255 = vmatmul.msk.f32.gmra.mxu2 %vm169_vm0, %v139_v24  ;;  %1285 = vmatmul.msk.f32.gmra.mxu3 %vm169_vm0, %v139_v24  ;;  %v296_v27 = vadd.f32 %v295_v25, %v1691_v31 }
  0xd2   :  { %v402_v26 = vpop.f32.mrf.mxu1 }
  0xd3   :  { %v403_v28 = vadd.f32 %v402_v26, %v1693_v32  ;;  %712 = vst [vmem:[#allocation2 + $0xc0] sm:$0xff] %v296_v27  ;;  %1195 = vmatmul.msk.f32.gmra.mxu0 %vm169_vm0, %v139_v24  ;;  %v146_v27 = vld [vmem:[%s2002_s0 + $0xe8] sm:$0xff]  ;;  %s1914_s0 = smov 0  }
  0xd4   :  { %v509_v29 = vpop.f32.mrf.mxu2  ;;  %v616_v30 = vpop.f32.mrf.mxu3 }
  0xd5   :  { %v510_v35 = vadd.f32 %v509_v29, %v1697_v33  ;;  %v617_v36 = vadd.f32 %v616_v30, %v1699_v34  ;;  %1225 = vmatmul.msk.f32.gmra.mxu1 %vm169_vm0, %v139_v24  ;;  %713 = vst [vmem:[#allocation2 + $0xc8] sm:$0xff] %v403_v28 }
  0xd7   :  { %714 = vst [vmem:[#allocation2 + $0xd0] sm:$0xff] %v510_v35 }
  0xd8   :  { %715 = vst [vmem:[#allocation2 + $0xd8] sm:$0xff] %v617_v36  ;;  %v298_v38 = vpop.f32.mrf.mxu0 }
  0xd9   :  { %1256 = vmatmul.msk.f32.gmra.mxu2 %vm169_vm0, %v140_v37  ;;  %1286 = vmatmul.msk.f32.gmra.mxu3 %vm169_vm0, %v140_v37  ;;  %v299_v40 = vadd.f32 %v298_v38, %v1691_v31 }
  0xda   :  { %v405_v39 = vpop.f32.mrf.mxu1 }
  0xdb   :  { %v406_v41 = vadd.f32 %v405_v39, %v1693_v32  ;;  %716 = vst [vmem:[#allocation2 + $0xe0] sm:$0xff] %v299_v40  ;;  %1196 = vmatmul.msk.f32.gmra.mxu0 %vm169_vm0, %v140_v37 }
  0xdc   :  { %v512_v42 = vpop.f32.mrf.mxu2  ;;  %v619_v43 = vpop.f32.mrf.mxu3 }
  0xdd   :  { %v513_v44 = vadd.f32 %v512_v42, %v1697_v33  ;;  %v620_v45 = vadd.f32 %v619_v43, %v1699_v34  ;;  %1226 = vmatmul.msk.f32.gmra.mxu1 %vm169_vm0, %v140_v37  ;;  %717 = vst [vmem:[#allocation2 + $0xe8] sm:$0xff] %v406_v41 }
  0xdf   :  { %718 = vst [vmem:[#allocation2 + $0xf0] sm:$0xff] %v513_v44 }
  0xe0   :  { %719 = vst [vmem:[#allocation2 + $0xf8] sm:$0xff] %v620_v45  ;;  %v301_v47 = vpop.f32.mrf.mxu0 }
  0xe1   :  { %1257 = vmatmul.msk.f32.gmra.mxu2 %vm169_vm0, %v141_v46  ;;  %1287 = vmatmul.msk.f32.gmra.mxu3 %vm169_vm0, %v141_v46  ;;  %v302_v49 = vadd.f32 %v301_v47, %v1691_v31 }
  0xe2   :  { %v408_v48 = vpop.f32.mrf.mxu1 }
  0xe3   :  { %v409_v50 = vadd.f32 %v408_v48, %v1693_v32  ;;  %720 = vst [vmem:[#allocation2 + $0x100] sm:$0xff] %v302_v49  ;;  %1197 = vmatmul.msk.f32.gmra.mxu0 %vm169_vm0, %v141_v46 }
  0xe4   :  { %v515_v51 = vpop.f32.mrf.mxu2  ;;  %v622_v52 = vpop.f32.mrf.mxu3 }
  0xe5   :  { %v516_v53 = vadd.f32 %v515_v51, %v1697_v33  ;;  %v623_v54 = vadd.f32 %v622_v52, %v1699_v34  ;;  %1227 = vmatmul.msk.f32.gmra.mxu1 %vm169_vm0, %v141_v46  ;;  %721 = vst [vmem:[#allocation2 + $0x108] sm:$0xff] %v409_v50 }
  0xe7   :  { %722 = vst [vmem:[#allocation2 + $0x110] sm:$0xff] %v516_v53 }
  0xe8   :  { %723 = vst [vmem:[#allocation2 + $0x118] sm:$0xff] %v623_v54  ;;  %v304_v56 = vpop.f32.mrf.mxu0 }
  0xe9   :  { %1258 = vmatmul.msk.f32.gmra.mxu2 %vm169_vm0, %v142_v55  ;;  %1288 = vmatmul.msk.f32.gmra.mxu3 %vm169_vm0, %v142_v55  ;;  %v305_v58 = vadd.f32 %v304_v56, %v1691_v31 }
  0xea   :  { %v411_v57 = vpop.f32.mrf.mxu1 }
  0xeb   :  { %v412_v59 = vadd.f32 %v411_v57, %v1693_v32  ;;  %724 = vst [vmem:[#allocation2 + $0x120] sm:$0xff] %v305_v58  ;;  %1198 = vmatmul.msk.f32.gmra.mxu0 %vm169_vm0, %v142_v55 }
  0xec   :  { %v518_v60 = vpop.f32.mrf.mxu2  ;;  %v625_v61 = vpop.f32.mrf.mxu3 }
  0xed   :  { %v519_v62 = vadd.f32 %v518_v60, %v1697_v33  ;;  %v626_v63 = vadd.f32 %v625_v61, %v1699_v34  ;;  %1228 = vmatmul.msk.f32.gmra.mxu1 %vm169_vm0, %v142_v55  ;;  %725 = vst [vmem:[#allocation2 + $0x128] sm:$0xff] %v412_v59 }
  0xef   :  { %726 = vst [vmem:[#allocation2 + $0x130] sm:$0xff] %v519_v62 }
  0xf0   :  { %727 = vst [vmem:[#allocation2 + $0x138] sm:$0xff] %v626_v63  ;;  %v307_v1 = vpop.f32.mrf.mxu0 }
  0xf1   :  { %1259 = vmatmul.msk.f32.gmra.mxu2 %vm169_vm0, %v143_v0  ;;  %1289 = vmatmul.msk.f32.gmra.mxu3 %vm169_vm0, %v143_v0  ;;  %v308_v3 = vadd.f32 %v307_v1, %v1691_v31 }
  0xf2   :  { %v414_v2 = vpop.f32.mrf.mxu1 }
  0xf3   :  { %v415_v4 = vadd.f32 %v414_v2, %v1693_v32  ;;  %728 = vst [vmem:[#allocation2 + $0x140] sm:$0xff] %v308_v3  ;;  %1199 = vmatmul.msk.f32.gmra.mxu0 %vm169_vm0, %v143_v0 }
  0xf4   :  { %v521_v5 = vpop.f32.mrf.mxu2  ;;  %v628_v6 = vpop.f32.mrf.mxu3 }
  0xf5   :  { %v522_v7 = vadd.f32 %v521_v5, %v1697_v33  ;;  %v629_v8 = vadd.f32 %v628_v6, %v1699_v34  ;;  %1229 = vmatmul.msk.f32.gmra.mxu1 %vm169_vm0, %v143_v0  ;;  %729 = vst [vmem:[#allocation2 + $0x148] sm:$0xff] %v415_v4 }
  0xf7   :  { %730 = vst [vmem:[#allocation2 + $0x150] sm:$0xff] %v522_v7 }
  0xf8   :  { %731 = vst [vmem:[#allocation2 + $0x158] sm:$0xff] %v629_v8  ;;  %v310_v10 = vpop.f32.mrf.mxu0 }
  0xf9   :  { %1260 = vmatmul.msk.f32.gmra.mxu2 %vm169_vm0, %v144_v9  ;;  %1290 = vmatmul.msk.f32.gmra.mxu3 %vm169_vm0, %v144_v9  ;;  %v311_v12 = vadd.f32 %v310_v10, %v1691_v31 }
  0xfa   :  { %v417_v11 = vpop.f32.mrf.mxu1 }
  0xfb   :  { %v418_v13 = vadd.f32 %v417_v11, %v1693_v32  ;;  %732 = vst [vmem:[#allocation2 + $0x160] sm:$0xff] %v311_v12  ;;  %1200 = vmatmul.msk.f32.gmra.mxu0 %vm169_vm0, %v144_v9 }
  0xfc   :  { %v524_v14 = vpop.f32.mrf.mxu2  ;;  %v631_v15 = vpop.f32.mrf.mxu3 }
  0xfd   :  { %v525_v16 = vadd.f32 %v524_v14, %v1697_v33  ;;  %v632_v17 = vadd.f32 %v631_v15, %v1699_v34  ;;  %1230 = vmatmul.msk.f32.gmra.mxu1 %vm169_vm0, %v144_v9  ;;  %733 = vst [vmem:[#allocation2 + $0x168] sm:$0xff] %v418_v13 }
  0xff   :  { %734 = vst [vmem:[#allocation2 + $0x170] sm:$0xff] %v525_v16 }
 0x100   :  { %735 = vst [vmem:[#allocation2 + $0x178] sm:$0xff] %v632_v17  ;;  %v313_v19 = vpop.f32.mrf.mxu0 }
 0x101   :  { %1261 = vmatmul.msk.f32.gmra.mxu2 %vm169_vm0, %v145_v18  ;;  %1291 = vmatmul.msk.f32.gmra.mxu3 %vm169_vm0, %v145_v18  ;;  %v314_v21 = vadd.f32 %v313_v19, %v1691_v31 }
 0x102   :  { %v420_v20 = vpop.f32.mrf.mxu1 }
 0x103   :  { %v421_v22 = vadd.f32 %v420_v20, %v1693_v32  ;;  %736 = vst [vmem:[#allocation2 + $0x180] sm:$0xff] %v314_v21  ;;  %1201 = vmatmul.msk.f32.gmra.mxu0 %vm169_vm0, %v145_v18 }
 0x104   :  { %v527_v23 = vpop.f32.mrf.mxu2  ;;  %v634_v24 = vpop.f32.mrf.mxu3 }
 0x105   :  { %v528_v25 = vadd.f32 %v527_v23, %v1697_v33  ;;  %v635_v26 = vadd.f32 %v634_v24, %v1699_v34  ;;  %1231 = vmatmul.msk.f32.gmra.mxu1 %vm169_vm0, %v145_v18  ;;  %737 = vst [vmem:[#allocation2 + $0x188] sm:$0xff] %v421_v22 }
 0x107   :  { %738 = vst [vmem:[#allocation2 + $0x190] sm:$0xff] %v528_v25 }
 0x108   :  { %739 = vst [vmem:[#allocation2 + $0x198] sm:$0xff] %v635_v26  ;;  %v316_v28 = vpop.f32.mrf.mxu0 }
 0x109   :  { %1262 = vmatmul.msk.f32.gmra.mxu2 %vm169_vm0, %v146_v27  ;;  %1292 = vmatmul.msk.f32.gmra.mxu3 %vm169_vm0, %v146_v27  ;;  %v317_v30 = vadd.f32 %v316_v28, %v1691_v31 }
 0x10a   :  { %v423_v29 = vpop.f32.mrf.mxu1 }
 0x10b   :  { %v424_v35 = vadd.f32 %v423_v29, %v1693_v32  ;;  %740 = vst [vmem:[#allocation2 + $0x1a0] sm:$0xff] %v317_v30  ;;  %1202 = vmatmul.msk.f32.gmra.mxu0 %vm169_vm0, %v146_v27 }
 0x10c   :  { %v530_v36 = vpop.f32.mrf.mxu2  ;;  %v637_v37 = vpop.f32.mrf.mxu3 }
 0x10d   :  { %v531_v38 = vadd.f32 %v530_v36, %v1697_v33  ;;  %v638_v39 = vadd.f32 %v637_v37, %v1699_v34  ;;  %1232 = vmatmul.msk.f32.gmra.mxu1 %vm169_vm0, %v146_v27  ;;  %741 = vst [vmem:[#allocation2 + $0x1a8] sm:$0xff] %v424_v35 }
 0x10f   :  { %742 = vst [vmem:[#allocation2 + $0x1b0] sm:$0xff] %v531_v38 }
 0x110   :  { %743 = vst [vmem:[#allocation2 + $0x1b8] sm:$0xff] %v638_v39  ;;  %v319_v40 = vpop.f32.mrf.mxu0 }
 0x111   :  { %v320_v42 = vadd.f32 %v319_v40, %v1691_v31 }
 0x112   :  { %v426_v41 = vpop.f32.mrf.mxu1 }
 0x113   :  { %v427_v43 = vadd.f32 %v426_v41, %v1693_v32  ;;  %744 = vst [vmem:[#allocation2 + $0x1c0] sm:$0xff] %v320_v42 }
 0x114   :  { %v533_v44 = vpop.f32.mrf.mxu2  ;;  %v640_v45 = vpop.f32.mrf.mxu3 }
 0x115   :  { %v534_v46 = vadd.f32 %v533_v44, %v1697_v33  ;;  %v641_v47 = vadd.f32 %v640_v45, %v1699_v34  ;;  %745 = vst [vmem:[#allocation2 + $0x1c8] sm:$0xff] %v427_v43 }
 0x117   :  { %746 = vst [vmem:[#allocation2 + $0x1d0] sm:$0xff] %v534_v46 }
 0x118   :  { %747 = vst [vmem:[#allocation2 + $0x1d8] sm:$0xff] %v641_v47  ;;  %v322_v48 = vpop.f32.mrf.mxu0 }
 0x119   :  { %v323_v50 = vadd.f32 %v322_v48, %v1691_v31 }
 0x11a   :  { %v429_v49 = vpop.f32.mrf.mxu1 }
 0x11b   :  { %v430_v51 = vadd.f32 %v429_v49, %v1693_v32  ;;  %748 = vst [vmem:[#allocation2 + $0x1e0] sm:$0xff] %v323_v50 }
 0x11c   :  { %v536_v52 = vpop.f32.mrf.mxu2  ;;  %v643_v53 = vpop.f32.mrf.mxu3 }
 0x11d   :  { %v537_v54 = vadd.f32 %v536_v52, %v1697_v33  ;;  %v644_v55 = vadd.f32 %v643_v53, %v1699_v34  ;;  %749 = vst [vmem:[#allocation2 + $0x1e8] sm:$0xff] %v430_v51 }
 0x11f   :  { %750 = vst [vmem:[#allocation2 + $0x1f0] sm:$0xff] %v537_v54 }
 0x120   :  { %751 = vst [vmem:[#allocation2 + $0x1f8] sm:$0xff] %v644_v55  ;;  %v325_v56 = vpop.f32.mrf.mxu0 }
 0x121   :  { %v326_v58 = vadd.f32 %v325_v56, %v1691_v31 }
 0x122   :  { %v432_v57 = vpop.f32.mrf.mxu1 }
 0x123   :  { %v433_v59 = vadd.f32 %v432_v57, %v1693_v32  ;;  %752 = vst [vmem:[#allocation2 + $0x200] sm:$0xff] %v326_v58 }
 0x124   :  { %v539_v60 = vpop.f32.mrf.mxu2  ;;  %v646_v61 = vpop.f32.mrf.mxu3 }
 0x125   :  { %v540_v62 = vadd.f32 %v539_v60, %v1697_v33  ;;  %v647_v63 = vadd.f32 %v646_v61, %v1699_v34  ;;  %753 = vst [vmem:[#allocation2 + $0x208] sm:$0xff] %v433_v59 }
 0x127   :  { %754 = vst [vmem:[#allocation2 + $0x210] sm:$0xff] %v540_v62 }
 0x128   :  { %755 = vst [vmem:[#allocation2 + $0x218] sm:$0xff] %v647_v63  ;;  %v328_v0 = vpop.f32.mrf.mxu0 }
 0x129   :  { %v329_v2 = vadd.f32 %v328_v0, %v1691_v31 }
 0x12a   :  { %v435_v1 = vpop.f32.mrf.mxu1 }
 0x12b   :  { %v436_v3 = vadd.f32 %v435_v1, %v1693_v32  ;;  %756 = vst [vmem:[#allocation2 + $0x220] sm:$0xff] %v329_v2 }
 0x12c   :  { %v542_v4 = vpop.f32.mrf.mxu2  ;;  %v649_v5 = vpop.f32.mrf.mxu3 }
 0x12d   :  { %v543_v6 = vadd.f32 %v542_v4, %v1697_v33  ;;  %v650_v7 = vadd.f32 %v649_v5, %v1699_v34  ;;  %757 = vst [vmem:[#allocation2 + $0x228] sm:$0xff] %v436_v3 }
 0x12f   :  { %758 = vst [vmem:[#allocation2 + $0x230] sm:$0xff] %v543_v6 }
 0x130   :  { %759 = vst [vmem:[#allocation2 + $0x238] sm:$0xff] %v650_v7  ;;  %v331_v8 = vpop.f32.mrf.mxu0 }
 0x131   :  { %v332_v10 = vadd.f32 %v331_v8, %v1691_v31 }
 0x132   :  { %v438_v9 = vpop.f32.mrf.mxu1 }
 0x133   :  { %v439_v11 = vadd.f32 %v438_v9, %v1693_v32  ;;  %760 = vst [vmem:[#allocation2 + $0x240] sm:$0xff] %v332_v10 }
 0x134   :  { %v545_v12 = vpop.f32.mrf.mxu2  ;;  %v652_v13 = vpop.f32.mrf.mxu3 }
 0x135   :  { %v546_v14 = vadd.f32 %v545_v12, %v1697_v33  ;;  %v653_v15 = vadd.f32 %v652_v13, %v1699_v34  ;;  %761 = vst [vmem:[#allocation2 + $0x248] sm:$0xff] %v439_v11 }
 0x137   :  { %762 = vst [vmem:[#allocation2 + $0x250] sm:$0xff] %v546_v14 }
 0x138   :  { %763 = vst [vmem:[#allocation2 + $0x258] sm:$0xff] %v653_v15  ;;  %v334_v16 = vpop.f32.mrf.mxu0 }
 0x139   :  { %v335_v18 = vadd.f32 %v334_v16, %v1691_v31 }
 0x13a   :  { %v441_v17 = vpop.f32.mrf.mxu1 }
 0x13b   :  { %v442_v19 = vadd.f32 %v441_v17, %v1693_v32  ;;  %764 = vst [vmem:[#allocation2 + $0x260] sm:$0xff] %v335_v18 }
 0x13c   :  { %v548_v20 = vpop.f32.mrf.mxu2  ;;  %v655_v21 = vpop.f32.mrf.mxu3 }
 0x13d   :  { %v549_v22 = vadd.f32 %v548_v20, %v1697_v33  ;;  %v656_v23 = vadd.f32 %v655_v21, %v1699_v34  ;;  %765 = vst [vmem:[#allocation2 + $0x268] sm:$0xff] %v442_v19 }
 0x13f   :  { %766 = vst [vmem:[#allocation2 + $0x270] sm:$0xff] %v549_v22 }
 0x140   :  { %767 = vst [vmem:[#allocation2 + $0x278] sm:$0xff] %v656_v23  ;;  %v337_v24 = vpop.f32.mrf.mxu0 }
 0x141   :  { %v338_v26 = vadd.f32 %v337_v24, %v1691_v31 }
 0x142   :  { %v444_v25 = vpop.f32.mrf.mxu1 }
 0x143   :  { %v445_v27 = vadd.f32 %v444_v25, %v1693_v32  ;;  %768 = vst [vmem:[#allocation2 + $0x280] sm:$0xff] %v338_v26 }
 0x144   :  { %v551_v28 = vpop.f32.mrf.mxu2  ;;  %v658_v29 = vpop.f32.mrf.mxu3 }
 0x145   :  { %v552_v30 = vadd.f32 %v551_v28, %v1697_v33  ;;  %v659_v35 = vadd.f32 %v658_v29, %v1699_v34  ;;  %769 = vst [vmem:[#allocation2 + $0x288] sm:$0xff] %v445_v27 }
 0x147   :  { %770 = vst [vmem:[#allocation2 + $0x290] sm:$0xff] %v552_v30 }
 0x148   :  { %771 = vst [vmem:[#allocation2 + $0x298] sm:$0xff] %v659_v35  ;;  %v340_v36 = vpop.f32.mrf.mxu0 }
 0x149   :  { %v341_v38 = vadd.f32 %v340_v36, %v1691_v31 }
 0x14a   :  { %v447_v37 = vpop.f32.mrf.mxu1 }
 0x14b   :  { %v448_v39 = vadd.f32 %v447_v37, %v1693_v32  ;;  %772 = vst [vmem:[#allocation2 + $0x2a0] sm:$0xff] %v341_v38 }
 0x14c   :  { %v554_v40 = vpop.f32.mrf.mxu2  ;;  %v661_v41 = vpop.f32.mrf.mxu3 }
 0x14d   :  { %v555_v42 = vadd.f32 %v554_v40, %v1697_v33  ;;  %v662_v43 = vadd.f32 %v661_v41, %v1699_v34  ;;  %773 = vst [vmem:[#allocation2 + $0x2a8] sm:$0xff] %v448_v39 }
 0x14f   :  { %774 = vst [vmem:[#allocation2 + $0x2b0] sm:$0xff] %v555_v42 }
 0x150   :  { %775 = vst [vmem:[#allocation2 + $0x2b8] sm:$0xff] %v662_v43  ;;  %v343_v44 = vpop.f32.mrf.mxu0 }
 0x151   :  { %v344_v46 = vadd.f32 %v343_v44, %v1691_v31 }
 0x152   :  { %v450_v45 = vpop.f32.mrf.mxu1 }
 0x153   :  { %v451_v47 = vadd.f32 %v450_v45, %v1693_v32  ;;  %776 = vst [vmem:[#allocation2 + $0x2c0] sm:$0xff] %v344_v46 }
 0x154   :  { %v557_v48 = vpop.f32.mrf.mxu2  ;;  %v664_v49 = vpop.f32.mrf.mxu3 }
 0x155   :  { %v558_v50 = vadd.f32 %v557_v48, %v1697_v33  ;;  %v665_v51 = vadd.f32 %v664_v49, %v1699_v34  ;;  %777 = vst [vmem:[#allocation2 + $0x2c8] sm:$0xff] %v451_v47 }
 0x157   :  { %778 = vst [vmem:[#allocation2 + $0x2d0] sm:$0xff] %v558_v50 }
 0x158   :  { %779 = vst [vmem:[#allocation2 + $0x2d8] sm:$0xff] %v665_v51  ;;  %v346_v52 = vpop.f32.mrf.mxu0 }
 0x159   :  { %v347_v54 = vadd.f32 %v346_v52, %v1691_v31 }
 0x15a   :  { %v453_v53 = vpop.f32.mrf.mxu1 }
 0x15b   :  { %v454_v55 = vadd.f32 %v453_v53, %v1693_v32  ;;  %780 = vst [vmem:[#allocation2 + $0x2e0] sm:$0xff] %v347_v54 }
 0x15c   :  { %v560_v56 = vpop.f32.mrf.mxu2  ;;  %v667_v57 = vpop.f32.mrf.mxu3 }
 0x15d   :  { %v561_v58 = vadd.f32 %v560_v56, %v1697_v33  ;;  %v668_v59 = vadd.f32 %v667_v57, %v1699_v34  ;;  %781 = vst [vmem:[#allocation2 + $0x2e8] sm:$0xff] %v454_v55 }
 0x15f   :  { %782 = vst [vmem:[#allocation2 + $0x2f0] sm:$0xff] %v561_v58 }
 0x160   :  { %783 = vst [vmem:[#allocation2 + $0x2f8] sm:$0xff] %v668_v59  ;;  %v349_v60 = vpop.f32.mrf.mxu0 }
 0x161   :  { %v350_v62 = vadd.f32 %v349_v60, %v1691_v31 }
 0x162   :  { %v456_v61 = vpop.f32.mrf.mxu1 }
 0x163   :  { %v457_v63 = vadd.f32 %v456_v61, %v1693_v32  ;;  %784 = vst [vmem:[#allocation2 + $0x300] sm:$0xff] %v350_v62 }
 0x164   :  { %v563_v0 = vpop.f32.mrf.mxu2  ;;  %v670_v1 = vpop.f32.mrf.mxu3 }
 0x165   :  { %v564_v2 = vadd.f32 %v563_v0, %v1697_v33  ;;  %v671_v3 = vadd.f32 %v670_v1, %v1699_v34  ;;  %785 = vst [vmem:[#allocation2 + $0x308] sm:$0xff] %v457_v63 }
 0x167   :  { %786 = vst [vmem:[#allocation2 + $0x310] sm:$0xff] %v564_v2 }
 0x168   :  { %787 = vst [vmem:[#allocation2 + $0x318] sm:$0xff] %v671_v3  ;;  %v352_v4 = vpop.f32.mrf.mxu0 }
 0x169   :  { %v353_v6 = vadd.f32 %v352_v4, %v1691_v31 }
 0x16a   :  { %v459_v5 = vpop.f32.mrf.mxu1 }
 0x16b   :  { %v460_v7 = vadd.f32 %v459_v5, %v1693_v32  ;;  %788 = vst [vmem:[#allocation2 + $0x320] sm:$0xff] %v353_v6 }
 0x16c   :  { %v566_v8 = vpop.f32.mrf.mxu2  ;;  %v673_v9 = vpop.f32.mrf.mxu3 }
 0x16d   :  { %v567_v10 = vadd.f32 %v566_v8, %v1697_v33  ;;  %v674_v11 = vadd.f32 %v673_v9, %v1699_v34  ;;  %789 = vst [vmem:[#allocation2 + $0x328] sm:$0xff] %v460_v7 }
 0x16f   :  { %790 = vst [vmem:[#allocation2 + $0x330] sm:$0xff] %v567_v10 }
 0x170   :  { %791 = vst [vmem:[#allocation2 + $0x338] sm:$0xff] %v674_v11  ;;  %v355_v12 = vpop.f32.mrf.mxu0 }
 0x171   :  { %v356_v14 = vadd.f32 %v355_v12, %v1691_v31 }
 0x172   :  { %v462_v13 = vpop.f32.mrf.mxu1 }
 0x173   :  { %v463_v15 = vadd.f32 %v462_v13, %v1693_v32  ;;  %792 = vst [vmem:[#allocation2 + $0x340] sm:$0xff] %v356_v14 }
 0x174   :  { %v569_v16 = vpop.f32.mrf.mxu2  ;;  %v676_v17 = vpop.f32.mrf.mxu3 }
 0x175   :  { %v570_v18 = vadd.f32 %v569_v16, %v1697_v33  ;;  %v677_v19 = vadd.f32 %v676_v17, %v1699_v34  ;;  %793 = vst [vmem:[#allocation2 + $0x348] sm:$0xff] %v463_v15 }
 0x177   :  { %794 = vst [vmem:[#allocation2 + $0x350] sm:$0xff] %v570_v18 }
 0x178   :  { %795 = vst [vmem:[#allocation2 + $0x358] sm:$0xff] %v677_v19  ;;  %v358_v20 = vpop.f32.mrf.mxu0 }
 0x179   :  { %v359_v22 = vadd.f32 %v358_v20, %v1691_v31 }
 0x17a   :  { %v465_v21 = vpop.f32.mrf.mxu1 }
 0x17b   :  { %v466_v23 = vadd.f32 %v465_v21, %v1693_v32  ;;  %796 = vst [vmem:[#allocation2 + $0x360] sm:$0xff] %v359_v22 }
 0x17c   :  { %v572_v24 = vpop.f32.mrf.mxu2  ;;  %v679_v25 = vpop.f32.mrf.mxu3 }
 0x17d   :  { %v573_v26 = vadd.f32 %v572_v24, %v1697_v33  ;;  %v680_v27 = vadd.f32 %v679_v25, %v1699_v34  ;;  %797 = vst [vmem:[#allocation2 + $0x368] sm:$0xff] %v466_v23 }
 0x17f   :  { %798 = vst [vmem:[#allocation2 + $0x370] sm:$0xff] %v573_v26 }
 0x180   :  { %799 = vst [vmem:[#allocation2 + $0x378] sm:$0xff] %v680_v27  ;;  %v361_v28 = vpop.f32.mrf.mxu0 }
 0x181   :  { %v362_v30 = vadd.f32 %v361_v28, %v1691_v31 }
 0x182   :  { %v468_v29 = vpop.f32.mrf.mxu1 }
 0x183   :  { %v469_v35 = vadd.f32 %v468_v29, %v1693_v32  ;;  %800 = vst [vmem:[#allocation2 + $0x380] sm:$0xff] %v362_v30 }
 0x184   :  { %v575_v36 = vpop.f32.mrf.mxu2  ;;  %v682_v37 = vpop.f32.mrf.mxu3 }
 0x185   :  { %v576_v38 = vadd.f32 %v575_v36, %v1697_v33  ;;  %v683_v39 = vadd.f32 %v682_v37, %v1699_v34  ;;  %801 = vst [vmem:[#allocation2 + $0x388] sm:$0xff] %v469_v35 }
 0x187   :  { %802 = vst [vmem:[#allocation2 + $0x390] sm:$0xff] %v576_v38 }
 0x188   :  { %803 = vst [vmem:[#allocation2 + $0x398] sm:$0xff] %v683_v39  ;;  %v364_v40 = vpop.f32.mrf.mxu0 }
 0x189   :  { %v365_v42 = vadd.f32 %v364_v40, %v1691_v31 }
 0x18a   :  { %v471_v41 = vpop.f32.mrf.mxu1 }
 0x18b   :  { %v472_v43 = vadd.f32 %v471_v41, %v1693_v32  ;;  %804 = vst [vmem:[#allocation2 + $0x3a0] sm:$0xff] %v365_v42 }
 0x18c   :  { %v578_v44 = vpop.f32.mrf.mxu2  ;;  %v685_v45 = vpop.f32.mrf.mxu3 }
 0x18d   :  { %v579_v46 = vadd.f32 %v578_v44, %v1697_v33  ;;  %v686_v47 = vadd.f32 %v685_v45, %v1699_v34  ;;  %805 = vst [vmem:[#allocation2 + $0x3a8] sm:$0xff] %v472_v43 }
 0x18f   :  { %806 = vst [vmem:[#allocation2 + $0x3b0] sm:$0xff] %v579_v46 }
 0x190   :  { %807 = vst [vmem:[#allocation2 + $0x3b8] sm:$0xff] %v686_v47 }
 0x191 LB: > { %v888_v31 = vld [vmem:[#allocation8 + $0x1e0] sm:$0xff]  ;;  %v889_v48 = vld [vmem:[#allocation8 + $0x1e8] sm:$0xff]  ;;  %v891_v32 = vld [vmem:[#allocation8 + $0x1f8] sm:$0xff]  ;;  %s1299_s15 = sshll.u32 %s1500_s0, 7  ;;  %s1293_s17 = sshll.u32 %s1500_s0, 3  ;;  %s1500_s0 = sphi %s1914_s0, %s816_s0  }
 0x192   : > { %892 = vmatpush.msra.mxu0 %v888_v31  ;;  %912 = vmatpush.msra.mxu1 %v889_v48  ;;  %v884_v49 = vld [vmem:[#allocation8 + $0x1c0] sm:$0xff]  ;;  %v885_v50 = vld [vmem:[#allocation8 + $0x1c8] sm:$0xff]  ;;  %v887_v33 = vld [vmem:[#allocation8 + $0x1d8] sm:$0xff]  ;;  %s1920_s16 = scalar_lea.vmem [#allocation11], %s1299_s15  ;;  %s818_s18 = sshra.s32 %s1293_s17, 3 }
 0x193   : > { %952 = vmatpush.msra.mxu3 %v891_v32  ;;  %v880_v34 = vld [vmem:[#allocation8 + $0x1a0] sm:$0xff]  ;;  %v881_v51 = vld [vmem:[#allocation8 + $0x1a8] sm:$0xff]  ;;  %v883_v52 = vld [vmem:[#allocation8 + $0x1b8] sm:$0xff]  ;;  %s1300_s19 = sshll.u32 %s818_s18, 5  ;;  %s816_s0 = sadd.s32 1, %s1500_s0  }
 0x194   : > { %893 = vmatpush.msra.mxu0 %v884_v49  ;;  %913 = vmatpush.msra.mxu1 %v885_v50  ;;  %v876_v53 = vld [vmem:[#allocation8 + $0x180] sm:$0xff]  ;;  %v877_v54 = vld [vmem:[#allocation8 + $0x188] sm:$0xff]  ;;  %v879_v55 = vld [vmem:[#allocation8 + $0x198] sm:$0xff]  ;;  %s1932_s2 = scalar_lea.vmem [#allocation2], %s1300_s19  ;;  %p813_p0 = scmp.ge.s32.totalorder %s816_s0, 30  }
 0x195   : > { %953 = vmatpush.msra.mxu3 %v887_v33  ;;  %v872_v56 = vld [vmem:[#allocation8 + $0x160] sm:$0xff]  ;;  %v873_v57 = vld [vmem:[#allocation8 + $0x168] sm:$0xff]  ;;  %v875_v58 = vld [vmem:[#allocation8 + $0x178] sm:$0xff]  ;;  %vm1130_vm13 = vcmask (%p813_p0), 15360  }
 0x196   : > { %894 = vmatpush.msra.mxu0 %v880_v34  ;;  %914 = vmatpush.msra.mxu1 %v881_v51  ;;  %v868_v59 = vld [vmem:[#allocation8 + $0x140] sm:$0xff]  ;;  %v869_v60 = vld [vmem:[#allocation8 + $0x148] sm:$0xff]  ;;  %v890_v61 = vld [vmem:[#allocation8 + $0x1f0] sm:$0xff] }
 0x197   : > { %954 = vmatpush.msra.mxu3 %v883_v52  ;;  %v871_v62 = vld [vmem:[#allocation8 + $0x158] sm:$0xff]  ;;  %v886_v63 = vld [vmem:[#allocation8 + $0x1d0] sm:$0xff]  ;;  %v864_v0 = vld [vmem:[#allocation8 + $0x120] sm:$0xff]  ;;  %932 = vmatpush.msra.mxu2 %v890_v61 }
 0x198   : > { %895 = vmatpush.msra.mxu0 %v876_v53  ;;  %915 = vmatpush.msra.mxu1 %v877_v54  ;;  %v865_v1 = vld [vmem:[#allocation8 + $0x128] sm:$0xff]  ;;  %v867_v2 = vld [vmem:[#allocation8 + $0x138] sm:$0xff]  ;;  %v882_v3 = vld [vmem:[#allocation8 + $0x1b0] sm:$0xff] }
 0x199   : > { %955 = vmatpush.msra.mxu3 %v879_v55  ;;  %v860_v4 = vld [vmem:[#allocation8 + $0x100] sm:$0xff]  ;;  %v861_v5 = vld [vmem:[#allocation8 + $0x108] sm:$0xff]  ;;  %933 = vmatpush.msra.mxu2 %v886_v63  ;;  %v863_v6 = vld [vmem:[#allocation8 + $0x118] sm:$0xff] }
 0x19a   : > { %896 = vmatpush.msra.mxu0 %v872_v56  ;;  %916 = vmatpush.msra.mxu1 %v873_v57  ;;  %v878_v7 = vld [vmem:[#allocation8 + $0x190] sm:$0xff]  ;;  %v856_v8 = vld [vmem:[#allocation8 + $0xe0] sm:$0xff]  ;;  %v857_v9 = vld [vmem:[#allocation8 + $0xe8] sm:$0xff] }
 0x19b   : > { %956 = vmatpush.msra.mxu3 %v875_v58  ;;  %934 = vmatpush.msra.mxu2 %v882_v3  ;;  %v859_v10 = vld [vmem:[#allocation8 + $0xf8] sm:$0xff]  ;;  %v874_v11 = vld [vmem:[#allocation8 + $0x170] sm:$0xff]  ;;  %v852_v12 = vld [vmem:[#allocation8 + $0xc0] sm:$0xff] }
 0x19c   : > { %897 = vmatpush.msra.mxu0 %v868_v59  ;;  %917 = vmatpush.msra.mxu1 %v869_v60  ;;  %v853_v13 = vld [vmem:[#allocation8 + $0xc8] sm:$0xff]  ;;  %v855_v14 = vld [vmem:[#allocation8 + $0xd8] sm:$0xff]  ;;  %v870_v15 = vld [vmem:[#allocation8 + $0x150] sm:$0xff] }
 0x19d   : > { %957 = vmatpush.msra.mxu3 %v871_v62  ;;  %935 = vmatpush.msra.mxu2 %v878_v7  ;;  %v848_v16 = vld [vmem:[#allocation8 + $0xa0] sm:$0xff]  ;;  %v849_v17 = vld [vmem:[#allocation8 + $0xa8] sm:$0xff]  ;;  %v851_v18 = vld [vmem:[#allocation8 + $0xb8] sm:$0xff] }
 0x19e   : > { %898 = vmatpush.msra.mxu0 %v864_v0  ;;  %918 = vmatpush.msra.mxu1 %v865_v1  ;;  %v866_v19 = vld [vmem:[#allocation8 + $0x130] sm:$0xff]  ;;  %v844_v20 = vld [vmem:[#allocation8 + $0x80] sm:$0xff]  ;;  %v845_v21 = vld [vmem:[#allocation8 + $0x88] sm:$0xff] }
 0x19f   : > { %958 = vmatpush.msra.mxu3 %v867_v2  ;;  %936 = vmatpush.msra.mxu2 %v874_v11  ;;  %v847_v22 = vld [vmem:[#allocation8 + $0x98] sm:$0xff]  ;;  %v862_v23 = vld [vmem:[#allocation8 + $0x110] sm:$0xff]  ;;  %v840_v24 = vld [vmem:[#allocation8 + $0x60] sm:$0xff] }
 0x1a0   : > { %899 = vmatpush.msra.mxu0 %v860_v4  ;;  %919 = vmatpush.msra.mxu1 %v861_v5  ;;  %v841_v25 = vld [vmem:[#allocation8 + $0x68] sm:$0xff]  ;;  %v843_v26 = vld [vmem:[#allocation8 + $0x78] sm:$0xff]  ;;  %v858_v27 = vld [vmem:[#allocation8 + $0xf0] sm:$0xff] }
 0x1a1   : > { %959 = vmatpush.msra.mxu3 %v863_v6  ;;  %937 = vmatpush.msra.mxu2 %v870_v15  ;;  %v836_v28 = vld [vmem:[#allocation8 + $0x40] sm:$0xff]  ;;  %v837_v29 = vld [vmem:[#allocation8 + $0x48] sm:$0xff]  ;;  %v839_v30 = vld [vmem:[#allocation8 + $0x58] sm:$0xff] }
 0x1a2   : > { %900 = vmatpush.msra.mxu0 %v856_v8  ;;  %920 = vmatpush.msra.mxu1 %v857_v9  ;;  %v854_v35 = vld [vmem:[#allocation8 + $0xd0] sm:$0xff]  ;;  %v832_v36 = vld [vmem:[#allocation8 + $0x20] sm:$0xff]  ;;  %v833_v37 = vld [vmem:[#allocation8 + $0x28] sm:$0xff] }
 0x1a3   : > { %960 = vmatpush.msra.mxu3 %v859_v10  ;;  %938 = vmatpush.msra.mxu2 %v866_v19  ;;  %v835_v38 = vld [vmem:[#allocation8 + $0x38] sm:$0xff]  ;;  %v850_v39 = vld [vmem:[#allocation8 + $0xb0] sm:$0xff]  ;;  %v828_v40 = vld [vmem:[#allocation8] sm:$0xff] }
 0x1a4   : > { %901 = vmatpush.msra.mxu0 %v852_v12  ;;  %921 = vmatpush.msra.mxu1 %v853_v13  ;;  %v829_v41 = vld [vmem:[#allocation8 + $0x8] sm:$0xff]  ;;  %v831_v42 = vld [vmem:[#allocation8 + $0x18] sm:$0xff]  ;;  %v846_v44 = vld [vmem:[#allocation8 + $0x90] sm:$0xff] }
 0x1a5   : > { %961 = vmatpush.msra.mxu3 %v855_v14  ;;  %939 = vmatpush.msra.mxu2 %v862_v23  ;;  %v827_v43 = vld [vmem:[#allocation3] sm:$0xff]  ;;  %v842_v45 = vld [vmem:[#allocation8 + $0x70] sm:$0xff]  ;;  %v1060_v48 = vld [vmem:[%s1920_s16 + $0x78] sm:$0xff] }
 0x1a6   : > { %902 = vmatpush.msra.mxu0 %v848_v16  ;;  %922 = vmatpush.msra.mxu1 %v849_v17  ;;  %v838_v46 = vld [vmem:[#allocation8 + $0x50] sm:$0xff]  ;;  %v1059_v32 = vld [vmem:[%s1920_s16 + $0x70] sm:$0xff]  ;;  %v1057_v50 = vld [vmem:[%s1920_s16 + $0x60] sm:$0xff] }
 0x1a7   : > { %962 = vmatpush.msra.mxu3 %v851_v18  ;;  %940 = vmatpush.msra.mxu2 %v858_v27  ;;  %v834_v47 = vld [vmem:[#allocation8 + $0x30] sm:$0xff]  ;;  %v1056_v33 = vld [vmem:[%s1920_s16 + $0x58] sm:$0xff]  ;;  %v1055_v34 = vld [vmem:[%s1920_s16 + $0x50] sm:$0xff] }
 0x1a8   : > { %903 = vmatpush.msra.mxu0 %v844_v20  ;;  %923 = vmatpush.msra.mxu1 %v845_v21  ;;  %v830_v31 = vld [vmem:[#allocation8 + $0x10] sm:$0xff]  ;;  %v1053_v52 = vld [vmem:[%s1920_s16 + $0x40] sm:$0xff]  ;;  %v1052_v53 = vld [vmem:[%s1920_s16 + $0x38] sm:$0xff] }
 0x1a9   : > { %963 = vmatpush.msra.mxu3 %v847_v22  ;;  %941 = vmatpush.msra.mxu2 %v854_v35  ;;  %v1058_v49 = vld [vmem:[%s1920_s16 + $0x68] sm:$0xff]  ;;  %v823_v54 = vld [vmem:[%s1932_s2] sm:$0xff]  ;;  %v1051_v56 = vld [vmem:[%s1920_s16 + $0x30] sm:$0xff] }
 0x1aa   : > { %904 = vmatpush.msra.mxu0 %v840_v24  ;;  %924 = vmatpush.msra.mxu1 %v841_v25  ;;  %v1054_v51 = vld [vmem:[%s1920_s16 + $0x48] sm:$0xff]  ;;  %v1049_v63 = vld [vmem:[%s1920_s16 + $0x20] sm:$0xff]  ;;  %v1048_v1 = vld [vmem:[%s1920_s16 + $0x18] sm:$0xff] }
 0x1ab   : > { %964 = vmatpush.msra.mxu3 %v843_v26  ;;  %942 = vmatpush.msra.mxu2 %v850_v39  ;;  %v824_v55 = vld [vmem:[%s1932_s2 + $0x8] sm:$0xff]  ;;  %v826_v2 = vld [vmem:[%s1932_s2 + $0x18] sm:$0xff]  ;;  %v1047_v3 = vld [vmem:[%s1920_s16 + $0x10] sm:$0xff] }
 0x1ac   : > { %905 = vmatpush.msra.mxu0 %v836_v28  ;;  %925 = vmatpush.msra.mxu1 %v837_v29  ;;  %v1050_v60 = vld [vmem:[%s1920_s16 + $0x28] sm:$0xff]  ;;  %v1045_v7 = vld [vmem:[%s1920_s16] sm:$0xff]  ;;  %v825_v13 = vld [vmem:[%s1932_s2 + $0x10] sm:$0xff] }
 0x1ad   : > { %965 = vmatpush.msra.mxu3 %v839_v30  ;;  %943 = vmatpush.msra.mxu2 %v846_v44  ;;  %v1046_v5 = vld [vmem:[%s1920_s16 + $0x8] sm:$0xff] }
 0x1ae   : > { %906 = vmatpush.msra.mxu0 %v832_v36  ;;  %926 = vmatpush.msra.mxu1 %v833_v37 }
 0x1af   : > { %966 = vmatpush.msra.mxu3 %v835_v38  ;;  %944 = vmatpush.msra.mxu2 %v842_v45 }
 0x1b0   : > { %907 = vmatpush.msra.mxu0 %v828_v40  ;;  %927 = vmatpush.msra.mxu1 %v829_v41 }
 0x1b1   : > { %967 = vmatpush.msra.mxu3 %v831_v42  ;;  %908 = vmatmul.f32.vlgmr.msra.gmra.mxu0 %v827_v43  ;;  %v1034_v42 = vld [vmem:[#allocation4] sm:$0xff] }
 0x1b2   : > { %928 = vmatmul.f32.vlgmr.msra.gmra.mxu1 %v827_v43  ;;  %968 = vmatmul.f32.vlgmr.msra.gmra.mxu3 %v827_v43 }
 0x1b3   : > { %945 = vmatpush.msra.mxu2 %v838_v46  ;;  %1061 = vmatpush.msrb.mxu0 %v1060_v48 }
 0x1b5   : > { %946 = vmatpush.msra.mxu2 %v834_v47  ;;  %1062 = vmatpush.msrb.mxu0 %v1059_v32 }
 0x1b7   : > { %947 = vmatpush.msra.mxu2 %v830_v31  ;;  %1063 = vmatpush.msrb.mxu0 %v1058_v49 }
 0x1b8   : > { %948 = vmatmul.f32.vlgmr.msra.gmra.mxu2 %v827_v43 }
 0x1b9   : > { %1064 = vmatpush.msrb.mxu0 %v1057_v50 }
 0x1bb   : > { %1065 = vmatpush.msrb.mxu0 %v1056_v33 }
 0x1bd   : > { %1066 = vmatpush.msrb.mxu0 %v1055_v34 }
 0x1bf   : > { %1067 = vmatpush.msrb.mxu0 %v1054_v51 }
 0x1c1   : > { %1068 = vmatpush.msrb.mxu0 %v1053_v52 }
 0x1c3   : > { %1069 = vmatpush.msrb.mxu0 %v1052_v53 }
 0x1c5   : > { %1070 = vmatpush.msrb.mxu0 %v1051_v56 }
 0x1c7   : > { %1071 = vmatpush.msrb.mxu0 %v1050_v60  ;;  %v1103_v60 = vld [vmem:[%s2008_s6 + $0x68] sm:$0xff] (%p813_p0) }
 0x1c9   : > { %1072 = vmatpush.msrb.mxu0 %v1049_v63  ;;  %v1100_v63 = vld [vmem:[%s2008_s6 + $0x50] sm:$0xff] (%p813_p0) }
 0x1cb   : > { %1073 = vmatpush.msrb.mxu0 %v1048_v1  ;;  %v1098_v1 = vld [vmem:[%s2008_s6 + $0x40] sm:$0xff] (%p813_p0) }
 0x1cd   : > { %1074 = vmatpush.msrb.mxu0 %v1047_v3  ;;  %v1096_v3 = vld [vmem:[%s2008_s6 + $0x30] sm:$0xff] (%p813_p0) }
 0x1cf   : > { %1075 = vmatpush.msrb.mxu0 %v1046_v5  ;;  %v1094_v5 = vld [vmem:[%s2008_s6 + $0x20] sm:$0xff] (%p813_p0) }
 0x1d1   : > { %1076 = vmatpush.msrb.mxu0 %v1045_v7 }
 0x22e   : > { %v909_v57 = vpop.f32.mrf.mxu0 }
 0x22f   : > { %v972_v58 = vadd.f32 %v909_v57, %v823_v54  ;;  %v929_v59 = vpop.f32.mrf.mxu1 }
 0x230   : > { %v973_v61 = vadd.f32 %v929_v59, %v824_v55  ;;  %v1042_v55 = vld [vmem:[#allocation5] sm:$0xff] }
 0x231   : > { %v1296_v62 = vmul.f32 -1.442695, %v972_v58  ;;  %v1105_v58 = vld [vmem:[%s2008_s6 + $0x78] sm:$0xff] (%p813_p0)  ;;  %v1104_v59 = vld [vmem:[%s2008_s6 + $0x70] sm:$0xff] (%p813_p0) }
 0x232   : > { %v1297_v0 = vmul.f32 -1.442695, %v973_v61  ;;  %1110 = vmatpush.msra.mxu0 (%p813_p0), %v1105_v58  ;;  %v1102_v61 = vld [vmem:[%s2008_s6 + $0x60] sm:$0xff] (%p813_p0) }
 0x233   : > { %1320 = vpow2.f32 %v1296_v62  ;;  %v1101_v62 = vld [vmem:[%s2008_s6 + $0x58] sm:$0xff] (%p813_p0) }
 0x234   : > { %1322 = vpow2.f32 %v1297_v0  ;;  %1111 = vmatpush.msra.mxu0 (%p813_p0), %v1104_v59  ;;  %v1099_v0 = vld [vmem:[%s2008_s6 + $0x48] sm:$0xff] (%p813_p0) }
 0x235   : > { %v969_v4 = vpop.f32.mrf.mxu3 }
 0x236   : > { %v975_v6 = vadd.f32 %v969_v4, %v826_v2  ;;  %1112 = vmatpush.msra.mxu0 (%p813_p0), %v1103_v60  ;;  %v1097_v2 = vld [vmem:[%s2008_s6 + $0x38] sm:$0xff] (%p813_p0)  ;;  %v1095_v4 = vld [vmem:[%s2008_s6 + $0x28] sm:$0xff] (%p813_p0) }
 0x238   : > { %v1298_v8 = vmul.f32 -1.442695, %v975_v6  ;;  %1113 = vmatpush.msra.mxu0 (%p813_p0), %v1102_v61  ;;  %v1336_v6 = vld [vmem:[#allocation13] ss:$0 sm:$0xff] (%p813_p0) }
 0x239   : > { %v1321_v9 = vpop.eup %1320 }
 0x23a   : > { %v1323_v10 = vpop.eup %1322  ;;  %v979_v11 = vadd.f32 1.0, %v1321_v9  ;;  %1324 = vpow2.f32 %v1298_v8  ;;  %1114 = vmatpush.msra.mxu0 (%p813_p0), %v1101_v62  ;;  %v1093_v8 = vld [vmem:[%s2008_s6 + $0x18] sm:$0xff] (%p813_p0)  ;;  %v1092_v9 = vld [vmem:[%s2008_s6 + $0x10] sm:$0xff] (%p813_p0) }
 0x23b   : > { %v998_v12 = vadd.f32 1.0, %v1323_v10  ;;  %v949_v14 = vpop.f32.mrf.mxu2 }
 0x23c   : > { %1326 = vrcp.f32 %v979_v11  ;;  %v974_v16 = vadd.f32 %v949_v14, %v825_v13  ;;  %v991_v24 = vand.u32 2147483648, %v979_v11  ;;  %v989_v27 = vand.u32 2147483647, %v979_v11  ;;  %1115 = vmatpush.msra.mxu0 (%p813_p0), %v1100_v63  ;;  %v1337_v14 = vld [vmem:[#allocation14] ss:$0 sm:$0xff] (%p813_p0) }
 0x23d   : > { %1328 = vrcp.f32 %v998_v12  ;;  %v1010_v25 = vand.u32 2147483648, %v998_v12  ;;  %v1008_v29 = vand.u32 2147483647, %v998_v12  ;;  %vm985_vm3 = vweird.f32 %v979_v11 }
 0x23e   : > { %vm1004_vm4 = vweird.f32 %v998_v12  ;;  %v992_v38 = vor.u32 1.1754944e-38, %v991_v24  ;;  %vm990_vm7 = vcmp.eq.f32.partialorder %v989_v27, 8.507059e+37  ;;  %1116 = vmatpush.msra.mxu0 (%p813_p0), %v1099_v0 }
 0x23f   : > { %v1011_v40 = vor.u32 1.1754944e-38, %v1010_v25  ;;  %vm1009_vm8 = vcmp.eq.f32.partialorder %v1008_v29, 8.507059e+37 }
 0x240   : > { %v1325_v15 = vpop.eup %1324  ;;  %1117 = vmatpush.msra.mxu0 (%p813_p0), %v1098_v1 }
 0x241   : > { %v1018_v17 = vadd.f32 1.0, %v1325_v15 }
 0x242   : > { %v1327_v18 = vpop.eup %1326  ;;  %1118 = vmatpush.msra.mxu0 (%p813_p0), %v1097_v2 }
 0x243   : > { %v1329_v19 = vpop.eup %1328  ;;  %v981_v20 = vmul.f32 %v1327_v18, %v979_v11  ;;  %1330 = vrcp.f32 %v1018_v17  ;;  %vm986_vm1 = vweird.f32 %v1327_v18  ;;  %v1030_v50 = vand.u32 2147483648, %v1018_v17  ;;  %v1091_v11 = vld [vmem:[%s2008_s6 + $0x8] sm:$0xff] (%p813_p0) }
 0x244   : > { %v1000_v21 = vmul.f32 %v1329_v19, %v998_v12  ;;  %1332 = vtanh.f32 %v974_v16  ;;  %vm1005_vm2 = vweird.f32 %v1329_v19  ;;  %vm987_vm5 = vmor %vm985_vm3, %vm986_vm1  ;;  %vm1024_vm10 = vweird.f32 %v1018_v17  ;;  %1119 = vmatpush.msra.mxu0 (%p813_p0), %v1096_v3  ;;  %v1090_v12 = vld [vmem:[%s2008_s6] sm:$0xff] (%p813_p0) }
 0x245   : > { %v982_v22 = vsub.f32 1.0, %v981_v20  ;;  %vm1006_vm6 = vmor %vm1004_vm4, %vm1005_vm2  ;;  %v1028_v33 = vand.u32 2147483647, %v1018_v17  ;;  %v1031_v51 = vor.u32 1.1754944e-38, %v1030_v50 }
 0x246   : > { %v1001_v23 = vsub.f32 1.0, %v1000_v21  ;;  %1120 = vmatpush.msra.mxu0 (%p813_p0), %v1095_v4 }
 0x247   : > { %v983_v26 = vmul.f32 %v1327_v18, %v982_v22  ;;  %vm1029_vm12 = vcmp.eq.f32.partialorder %v1028_v33, 8.507059e+37 }
 0x248   : > { %v1002_v28 = vmul.f32 %v1329_v19, %v1001_v23  ;;  %1121 = vmatpush.msra.mxu0 (%p813_p0), %v1094_v5 }
 0x249   : > { %v1331_v30 = vpop.eup %1330  ;;  %v984_v35 = vadd.f32 %v1327_v18, %v983_v26 }
 0x24a   : > { %v1333_v36 = vpop.eup %1332  ;;  %v1020_v37 = vmul.f32 %v1331_v30, %v1018_v17  ;;  %v1003_v39 = vadd.f32 %v1329_v19, %v1002_v28  ;;  %vm1025_vm9 = vweird.f32 %v1331_v30  ;;  %1122 = vmatpush.msra.mxu0 (%p813_p0), %v1093_v8 }
 0x24b   : > { %v988_v41 = vsel %vm987_vm5, %v1327_v18, %v984_v35  ;;  %vm1026_vm11 = vmor %vm1024_vm10, %vm1025_vm9 }
 0x24c   : > { %v993_v43 = vsel %vm990_vm7, %v992_v38, %v988_v41  ;;  %v1007_v44 = vsel %vm1006_vm6, %v1329_v19, %v1003_v39  ;;  %v1021_v45 = vsub.f32 1.0, %v1020_v37  ;;  %1123 = vmatpush.msra.mxu0 (%p813_p0), %v1092_v9 }
 0x24d   : > { %v1012_v46 = vsel %vm1009_vm8, %v1011_v40, %v1007_v44  ;;  %v1036_v47 = vmul.f32 %v1333_v36, %v993_v43 }
 0x24e   : > { %v1035_v31 = vmul.f32 %v1034_v42, %v1012_v46  ;;  %v1022_v48 = vmul.f32 %v1331_v30, %v1021_v45  ;;  %1124 = vmatpush.msra.mxu0 (%p813_p0), %v1091_v11 }
 0x250   : > { %v1037_v32 = vadd.f32 %v1036_v47, %v1035_v31  ;;  %v1023_v49 = vadd.f32 %v1331_v30, %v1022_v48  ;;  %1125 = vmatpush.msra.mxu0 (%p813_p0), %v1090_v12 }
 0x252   : > { %1040 = vst [vmem:[#allocation4] sm:$0xff] %v1037_v32  ;;  %1334 = vtanh.f32 %v1037_v32  ;;  %v1027_v34 = vsel %vm1026_vm11, %v1331_v30, %v1023_v49 }
 0x253   : > { %v1032_v53 = vsel %vm1029_vm12, %v1031_v51, %v1027_v34 }
 0x258   : > { %v1335_v52 = vpop.eup %1334 }
 0x259   : > { %v1039_v54 = vmul.f32 %v1335_v52, %v1032_v53 }
 0x25b   : > { %1041 = vst [vmem:[#allocation3] sm:$0xff] %v1039_v54  ;;  %1077 = vmatmul.f32.vlgmr.msrb.gmra.mxu0 %v1039_v54 }
 0x2d7   :  { %815 = sbr.rel (!%p813_p0) target bundleno = 401 (0x191), region = 85 }
 0x2d8   : > { %v1078_v56 = vpop.f32.mrf.mxu0 }
 0x2d9   : > { %v1081_v57 = vadd.f32 %v1078_v56, %v1042_v55 }
 0x2db   : > { %1082 = vst [vmem:[#allocation5] sm:$0xff] %v1081_v57 }
 0x2e2   :  { %v1083_v7 = vld [vmem:[#allocation5] sm:$0xff] }
 0x2e3   :  { %v1088_v10 = vadd.f32 %v1336_v6, %v1083_v7 }
 0x2e5   :  { %v1089_v13 = vmax.f32 %v1088_v10, 0.0 }
 0x2e7   :  { %1126 = vmatmul.f32.vlgmr.msra.gmra.mxu0 %v1089_v13 }
 0x364   :  { %v1127_v15 = vpop.f32.mrf.mxu0 }
 0x365   :  { %v1128_v16 = vadd.f32 %v1337_v14, %v1127_v15 }
 0x367   :  { %v1131_v17 = vsel %vm1130_vm13, %v1128_v16, -inf }
 0x368   :  { %1132 = vmax.xlane.f32.xlu0 %v1131_v17 }
 0x3db   :  { %v1133_v18 = vpop.xlane.xlu0 %1132 }
 0x3dc   :  { %v1134_v19 = vsub.f32 %v1128_v16, %v1133_v18 }
 0x3de   :  { %v1135_v20 = vmul.f32 1.442695, %v1134_v19 }
 0x3e0   :  { %1338 = vpow2.f32 %v1135_v20 }
 0x3e6   :  { %v1339_v21 = vpop.eup %1338 }
 0x3e7   :  { %v1137_v22 = vsel %vm1130_vm13, %v1339_v21, 0.0 }
 0x3e8   :  { %1138 = vadd.xlane.f32.xlu0 %v1137_v22 }
 0x45b   :  { %v1139_v23 = vpop.xlane.xlu0 %1138 }
 0x45c   :  { %1340 = vrcp.f32 %v1139_v23  ;;  %v1151_v27 = vand.u32 2147483648, %v1139_v23  ;;  %v1149_v29 = vand.u32 2147483647, %v1139_v23  ;;  %vm1145_vm15 = vweird.f32 %v1139_v23 }
 0x45e   :  { %v1152_v35 = vor.u32 1.1754944e-38, %v1151_v27  ;;  %vm1150_vm1 = vcmp.eq.f32.partialorder %v1149_v29, 8.507059e+37 }
 0x462   :  { %v1341_v24 = vpop.eup %1340 }
 0x463   :  { %v1141_v25 = vmul.f32 %v1341_v24, %v1139_v23  ;;  %vm1146_vm14 = vweird.f32 %v1341_v24 }
 0x464   :  { %vm1147_vm0 = vmor %vm1145_vm15, %vm1146_vm14 }
 0x465   :  { %v1142_v26 = vsub.f32 1.0, %v1141_v25 }
 0x467   :  { %v1143_v28 = vmul.f32 %v1341_v24, %v1142_v26 }
 0x469   :  { %v1144_v30 = vadd.f32 %v1341_v24, %v1143_v28 }
 0x46b   :  { %v1148_v36 = vsel %vm1147_vm0, %v1341_v24, %v1144_v30 }
 0x46c   :  { %v1153_v37 = vsel %vm1150_vm1, %v1152_v35, %v1148_v36 }
 0x46d   :  { %v1154_v38 = vmul.f32 %v1339_v21, %v1153_v37 }
 0x46f   :  { %1155 = vst.msk [vmem:[%s2010_s8] sm:$0xff] %vm1130_vm13, %v1154_v38 }
 0x470   :  { %1160 = vsyncpa [#allocation7], 1 }
 0x471   :  { %1161 = vsyncpa [#allocation9], 1 }
 0x472   :  { %1162 = vsyncpa [#allocation12], 1 }
 0x473   :  { %1163 = vsyncpa [#allocation15], 1 }

</bundles_post_ra>
